<compile_context>
chip_gen: v6e
topology: v6e:2x2x1
jax: 0.10.0
libtpu: 0.0.40
codegen_flags: <defaults>
</compile_context>

<pallas_src>
import math

import jax
import jax.numpy as jnp
import numpy as np
from jax.experimental import pallas as pl
from jax.experimental.pallas import tpu as pltpu

# ----------------------- small config (consistent with the module) -----------
B, S = 2, 8                      # batch, seq_len
BS = B * S                       # 16 rows
D = 128                          # args.input_dim
N_HEADS_Q = 4                    # args.n_heads
N_HEADS_KV = 2                   # args.n_kv_heads
HEAD_DIM = D // N_HEADS_Q        # 32
HD2 = HEAD_DIM // 2              # 16 (RoPE pair count)
N_REP = N_HEADS_Q // N_HEADS_KV  # 2
KV_HALF = N_HEADS_KV * HD2       # 32 (real-half width of K or of V, all kv heads)
KV_W = 2 * KV_HALF               # 64 (K real halves + V real halves)
QKV_W = D + 2 * KV_W             # 256 fused QKV output width
MULTIPLE_OF = 256
HIDDEN = MULTIPLE_OF * ((int(2 * (4 * D) / 3) + MULTIPLE_OF - 1) // MULTIPLE_OF)  # 512
EPS = 1e-5
START_POS = 0
NEG_INF = -1e30


# ----------------------------- kernel helpers ---------------------------------
def _mm(a, b):
    # (M, K) @ (K, N) -> (M, N), f32 accumulation on the MXU.
    return jax.lax.dot_general(a, b, (((1,), (0,)), ((), ())),
                               preferred_element_type=jnp.float32)


def _mm_t(a, b):
    # (M, K) x (N, K) -> (M, N), contracting last dims (q @ k^T).
    return jax.lax.dot_general(a, b, (((1,), (1,)), ((), ())),
                               preferred_element_type=jnp.float32)


def _rms(x, g):
    return g * (x * jax.lax.rsqrt(jnp.mean(x * x, axis=-1, keepdims=True) + EPS))


# ------------------------------ fused kernel ----------------------------------
def _encoder_block_kernel(x_ref, wqkv_ref, wo_ref, w13_ref, w2_ref,
                          g1_ref, g2_ref, cos_ref, sin_ref, mask_ref, o_ref):
    """Whole EncoderBlock forward on (B*S, D) rows; everything VMEM-resident."""
    x = x_ref[...]                                    # (BS, D) f32
    cos = cos_ref[...]                                # (BS, KV_W) f32
    sin = sin_ref[...]
    mask = mask_ref[...]                              # (BS, BS) block-diag 0 / -1e30

    # ---- attention_norm + fused QKV projection (one lane-dense MXU op) ----
    xn = _rms(x, g1_ref[...])                         # f32
    qkv = _mm(xn.astype(jnp.bfloat16), wqkv_ref[...])  # (BS, 256) f32 acc
    q = qkv[:, :D]                                    # (BS, 128) per head [r|i]
    kv_r = qkv[:, D:D + KV_W]                         # (BS, 64) [K_r | V_r]
    kv_i = qkv[:, D + KV_W:]                          # (BS, 64) [K_i | V_i]

    # ---- RoPE on K and V, computed once, full width (VPU, f32) ----
    kv_rr = kv_r * cos - kv_i * sin                   # rotated real halves
    kv_ri = kv_r * sin + kv_i * cos                   # rotated imag halves

    # ---- per-q-head attention; batches handled by the block-diagonal mask ----
    scale = 1.0 / math.sqrt(HEAD_DIM)
    heads = []
    for h in range(N_HEADS_Q):
        kvh = h // N_REP                              # repeat_kv mapping
        q_r = q[:, h * HEAD_DIM:h * HEAD_DIM + HD2]
        q_i = q[:, h * HEAD_DIM + HD2:(h + 1) * HEAD_DIM]
        k_r = kv_rr[:, kvh * HD2:(kvh + 1) * HD2]
        k_i = kv_ri[:, kvh * HD2:(kvh + 1) * HD2]
        v_r = kv_rr[:, KV_HALF + kvh * HD2:KV_HALF + (kvh + 1) * HD2]
        v_i = kv_ri[:, KV_HALF + kvh * HD2:KV_HALF + (kvh + 1) * HD2]

        s = (_mm_t(q_r, k_r) + _mm_t(q_i, k_i)) * scale + mask   # (BS, BS)
        s = s - jnp.max(s, axis=-1, keepdims=True)
        p = jnp.exp(s)
        p = p * pl.reciprocal(jnp.sum(p, axis=-1, keepdims=True), approx=True)
        heads.append(_mm(p, v_r))                     # (BS, HD2)
        heads.append(_mm(p, v_i))

    attn = jnp.concatenate(heads, axis=-1)            # (BS, 128), wo_p row order
    h1 = x + _mm(attn.astype(jnp.bfloat16), wo_ref[...])   # residual

    # ---- ffn_norm + fused SwiGLU FFN ----
    hn = _rms(h1, g2_ref[...])
    u = _mm(hn.astype(jnp.bfloat16), w13_ref[...])    # (BS, 2*HIDDEN)
    a = u[:, :HIDDEN]
    b = u[:, HIDDEN:]
    sw = (a * jax.nn.sigmoid(a)) * b                  # SiLU(w1 x) * w3 x, f32
    o_ref[...] = h1 + _mm(sw.astype(jnp.bfloat16), w2_ref[...])   # residual


# ------------------------------ wrapper ---------------------------------------
def encoder_block(x, kern, cos, sin, start_pos=0):
    assert start_pos == 0  # TODO(synk): persistent KV cache for start_pos > 0

    # Pre-broadcast cos/sin to the fused [K_h0 | K_h1 | V_h0 | V_h1] lane layout.
    cos_w = jnp.tile(cos, (B, 2 * N_HEADS_KV)).astype(jnp.float32)   # (BS, 64)
    sin_w = jnp.tile(sin, (B, 2 * N_HEADS_KV)).astype(jnp.float32)
    bid = jnp.arange(BS) // S
    mask = jnp.where(bid[:, None] == bid[None, :], 0.0, NEG_INF).astype(jnp.float32)

    vmem = pl.BlockSpec(memory_space=pltpu.MemorySpace.VMEM)
    out = pl.pallas_call(
        _encoder_block_kernel,
        out_shape=jax.ShapeDtypeStruct((BS, D), jnp.float32),
        in_specs=[vmem] * 10,
        out_specs=vmem,
    )(x.reshape(BS, D), kern["wqkv"], kern["wo"], kern["w13"], kern["w2"],
      kern["g1"], kern["g2"], cos_w, sin_w, mask)
    return out.reshape(B, S, D)


# ----------------- parameter setup (host-side fusion / de-interleave) ---------
def make_params(key):
    ks = jax.random.split(key, 9)
    wq = jax.random.normal(ks[0], (D, N_HEADS_Q * HEAD_DIM), jnp.float32) * D ** -0.5
    wk = jax.random.normal(ks[1], (D, N_HEADS_KV * HEAD_DIM), jnp.float32) * D ** -0.5
    wv = jax.random.normal(ks[2], (D, N_HEADS_KV * HEAD_DIM), jnp.float32) * D ** -0.5
    wo = jax.random.normal(ks[3], (N_HEADS_Q * HEAD_DIM, D), jnp.float32) * D ** -0.5
    w1 = jax.random.normal(ks[4], (D, HIDDEN), jnp.float32) * D ** -0.5
    w3 = jax.random.normal(ks[5], (D, HIDDEN), jnp.float32) * D ** -0.5
    w2 = jax.random.normal(ks[6], (HIDDEN, D), jnp.float32) * HIDDEN ** -0.5
    g1 = 1.0 + 0.01 * jax.random.normal(ks[7], (D,), jnp.float32)
    g2 = 1.0 + 0.01 * jax.random.normal(ks[8], (D,), jnp.float32)

    orig = dict(wq=wq, wk=wk, wv=wv, wo=wo, w1=w1, w3=w3, w2=w2, g1=g1, g2=g2)

    # Q columns: per head, de-interleave RoPE pairs -> [real(16) | imag(16)].
    wq4 = wq.reshape(D, N_HEADS_Q, HD2, 2)
    wq_d = jnp.concatenate([wq4[..., 0], wq4[..., 1]], axis=-1)
    wq_d = wq_d.reshape(D, N_HEADS_Q * HEAD_DIM)
    # K / V columns: split into real / imag halves over all kv heads.
    wk4 = wk.reshape(D, N_HEADS_KV, HD2, 2)
    wv4 = wv.reshape(D, N_HEADS_KV, HD2, 2)
    wk_r = wk4[..., 0].reshape(D, KV_HALF)
    wk_i = wk4[..., 1].reshape(D, KV_HALF)
    wv_r = wv4[..., 0].reshape(D, KV_HALF)
    wv_i = wv4[..., 1].reshape(D, KV_HALF)
    # Fused QKV weight: columns = [Q(128) | K_r,V_r(64) | K_i,V_i(64)].
    wqkv = jnp.concatenate([wq_d, wk_r, wv_r, wk_i, wv_i], axis=-1)   # (128, 256)
    # Output projection with rows permuted to the de-interleaved head layout.
    wo4 = wo.reshape(N_HEADS_Q, HD2, 2, D)
    wo_p = jnp.concatenate([wo4[:, :, 0, :], wo4[:, :, 1, :]], axis=1)
    wo_p = wo_p.reshape(N_HEADS_Q * HEAD_DIM, D)                       # (128, 128)
    # Fused gate/up FFN weight.
    w13 = jnp.concatenate([w1, w3], axis=-1)                           # (128, 1024)

    kern = dict(
        wqkv=wqkv.astype(jnp.bfloat16),
        wo=wo_p.astype(jnp.bfloat16),
        w13=w13.astype(jnp.bfloat16),
        w2=w2.astype(jnp.bfloat16),
        g1=g1.reshape(1, D),
        g2=g2.reshape(1, D),
    )
    return orig, kern


# --------------------------- pure-JAX reference -------------------------------
def ref_encoder_block(x, p, cos, sin):
    def rms(t, g):
        return g * (t * jax.lax.rsqrt(jnp.mean(t * t, -1, keepdims=True) + EPS))

    with jax.default_matmul_precision("float32"):
        xn = rms(x, p["g1"])
        q = (xn @ p["wq"]).reshape(B, S, N_HEADS_Q, HEAD_DIM)
        k = (xn @ p["wk"]).reshape(B, S, N_HEADS_KV, HEAD_DIM)
        v = (xn @ p["wv"]).reshape(B, S, N_HEADS_KV, HEAD_DIM)

        def rope(t):
            tr = t.reshape(B, S, t.shape[2], HD2, 2)
            re, im = tr[..., 0], tr[..., 1]
            c = cos[None, :, None, :]
            s_ = sin[None, :, None, :]
            return jnp.stack([re * c - im * s_, re * s_ + im * c],
                             axis=-1).reshape(t.shape)

        k = rope(k)      # module rotates K and V (not Q)
        v = rope(v)
        k = jnp.repeat(k, N_REP, axis=2)   # repeat_kv
        v = jnp.repeat(v, N_REP, axis=2)

        qT, kT, vT = (t.transpose(0, 2, 1, 3) for t in (q, k, v))
        score = jnp.einsum("bhqd,bhkd->bhqk", qT, kT) / math.sqrt(HEAD_DIM)
        score = jax.nn.softmax(score, axis=-1)
        out = jnp.einsum("bhqk,bhkd->bhqd", score, vT)
        out = out.transpose(0, 2, 1, 3).reshape(B, S, N_HEADS_Q * HEAD_DIM)
        h = x + out @ p["wo"]

        hn = rms(h, p["g2"])
        a = hn @ p["w1"]
        bb = hn @ p["w3"]
        return h + (a * jax.nn.sigmoid(a) * bb) @ p["w2"]


# --------------------------------- main ----------------------------------------
if __name__ == "__main__":
    key = jax.random.PRNGKey(0)
    kp, kx = jax.random.split(key)
    orig_params, kern_params = make_params(kp)
    x = jax.random.normal(kx, (B, S, D), jnp.float32)

    # freqs_complex for positions [START_POS, START_POS + S), theta = 10000
    inv = 1.0 / (10000.0 ** (jnp.arange(0, HEAD_DIM, 2, dtype=jnp.float32) / HEAD_DIM))
    pos = jnp.arange(START_POS, START_POS + S, dtype=jnp.float32)
    ang = jnp.outer(pos, inv)          # (S, HD2)
    cos, sin = jnp.cos(ang), jnp.sin(ang)

    out = encoder_block(x, kern_params, cos, sin, start_pos=START_POS)
    out = jax.block_until_ready(out)

    ref = ref_encoder_block(x, orig_params, cos, sin)
    # bf16 MXU inputs (f32 accumulation) vs f32 reference -> slightly looser tol.
    np.testing.assert_allclose(np.asarray(out), np.asarray(ref),
                               rtol=3e-2, atol=3e-2)
    print("KERNEL_OK")
</pallas_src>

<mosaic_0001>
module attributes {stable_mosaic.version = 11 : i64} {
  func.func @_encoder_block_kernel(%arg0: memref<16x128xf32, #tpu.memory_space<vmem>>, %arg1: memref<128x256xbf16, #tpu.memory_space<vmem>>, %arg2: memref<128x128xbf16, #tpu.memory_space<vmem>>, %arg3: memref<128x1024xbf16, #tpu.memory_space<vmem>>, %arg4: memref<512x128xbf16, #tpu.memory_space<vmem>>, %arg5: memref<1x128xf32, #tpu.memory_space<vmem>>, %arg6: memref<1x128xf32, #tpu.memory_space<vmem>>, %arg7: memref<16x64xf32, #tpu.memory_space<vmem>>, %arg8: memref<16x64xf32, #tpu.memory_space<vmem>>, %arg9: memref<16x16xf32, #tpu.memory_space<vmem>>, %arg10: memref<16x128xf32, #tpu.memory_space<vmem>>) attributes {dimension_semantics = [], scalar_prefetch = 0 : i64, scratch_operands = 0 : i64, tpu.core_type = #tpu.core_type<tc>} {
    %c0 = arith.constant 0 : index
    %c0_0 = arith.constant 0 : index
    %0 = vector.load %arg0[%c0, %c0_0] : memref<16x128xf32, #tpu.memory_space<vmem>>, vector<16x128xf32>
    %c0_1 = arith.constant 0 : index
    %c0_2 = arith.constant 0 : index
    %1 = vector.load %arg7[%c0_1, %c0_2] : memref<16x64xf32, #tpu.memory_space<vmem>>, vector<16x64xf32>
    %c0_3 = arith.constant 0 : index
    %c0_4 = arith.constant 0 : index
    %2 = vector.load %arg8[%c0_3, %c0_4] : memref<16x64xf32, #tpu.memory_space<vmem>>, vector<16x64xf32>
    %c0_5 = arith.constant 0 : index
    %c0_6 = arith.constant 0 : index
    %3 = vector.load %arg9[%c0_5, %c0_6] : memref<16x16xf32, #tpu.memory_space<vmem>>, vector<16x16xf32>
    %c0_7 = arith.constant 0 : index
    %c0_8 = arith.constant 0 : index
    %4 = vector.load %arg5[%c0_7, %c0_8] : memref<1x128xf32, #tpu.memory_space<vmem>>, vector<1x128xf32>
    %5 = arith.mulf %0, %0 : vector<16x128xf32>
    %cst = arith.constant dense<0.000000e+00> : vector<16xf32>
    %6 = vector.multi_reduction <add>, %5, %cst [1] : vector<16x128xf32> to vector<16xf32>
    %7 = vector.shape_cast %6 : vector<16xf32> to vector<16x1xf32>
    %cst_9 = arith.constant 1.280000e+02 : f32
    %8 = vector.broadcast %cst_9 : f32 to vector<16x1xf32>
    %9 = arith.divf %7, %8 : vector<16x1xf32>
    %cst_10 = arith.constant 9.99999974E-6 : f32
    %10 = vector.broadcast %cst_10 : f32 to vector<16x1xf32>
    %11 = arith.addf %9, %10 : vector<16x1xf32>
    %12 = math.rsqrt %11 : vector<16x1xf32>
    %13 = vector.broadcast %12 : vector<16x1xf32> to vector<16x128xf32>
    %14 = arith.mulf %0, %13 : vector<16x128xf32>
    %15 = vector.broadcast %4 : vector<1x128xf32> to vector<16x128xf32>
    %16 = arith.mulf %15, %14 : vector<16x128xf32>
    %17 = arith.truncf %16 : vector<16x128xf32> to vector<16x128xbf16>
    %c0_11 = arith.constant 0 : index
    %c0_12 = arith.constant 0 : index
    %18 = vector.load %arg1[%c0_11, %c0_12] : memref<128x256xbf16, #tpu.memory_space<vmem>>, vector<128x256xbf16>
    %cst_13 = arith.constant dense<0.000000e+00> : vector<16x256xf32>
    %19 = tpu.matmul %17, %18, %cst_13 {dimension_numbers = #tpu.dot_dimension_numbers<[1], [0], [0], [1], [0, 0, 1, 1], [], []>} : vector<16x128xbf16>, vector<128x256xbf16>, vector<16x256xf32> -> vector<16x256xf32>
    %20 = vector.extract_strided_slice %19 {offsets = [0, 0], sizes = [16, 128], strides = [1, 1]} : vector<16x256xf32> to vector<16x128xf32>
    %21 = vector.extract_strided_slice %19 {offsets = [0, 128], sizes = [16, 64], strides = [1, 1]} : vector<16x256xf32> to vector<16x64xf32>
    %22 = vector.extract_strided_slice %19 {offsets = [0, 192], sizes = [16, 64], strides = [1, 1]} : vector<16x256xf32> to vector<16x64xf32>
    %23 = arith.mulf %21, %1 : vector<16x64xf32>
    %24 = arith.mulf %22, %2 : vector<16x64xf32>
    %25 = arith.subf %23, %24 : vector<16x64xf32>
    %26 = arith.mulf %21, %2 : vector<16x64xf32>
    %27 = arith.mulf %22, %1 : vector<16x64xf32>
    %28 = arith.addf %26, %27 : vector<16x64xf32>
    %29 = vector.extract_strided_slice %20 {offsets = [0, 0], sizes = [16, 16], strides = [1, 1]} : vector<16x128xf32> to vector<16x16xf32>
    %30 = vector.extract_strided_slice %20 {offsets = [0, 16], sizes = [16, 16], strides = [1, 1]} : vector<16x128xf32> to vector<16x16xf32>
    %31 = vector.extract_strided_slice %25 {offsets = [0, 0], sizes = [16, 16], strides = [1, 1]} : vector<16x64xf32> to vector<16x16xf32>
    %32 = vector.extract_strided_slice %28 {offsets = [0, 0], sizes = [16, 16], strides = [1, 1]} : vector<16x64xf32> to vector<16x16xf32>
    %33 = vector.extract_strided_slice %25 {offsets = [0, 32], sizes = [16, 16], strides = [1, 1]} : vector<16x64xf32> to vector<16x16xf32>
    %34 = vector.extract_strided_slice %28 {offsets = [0, 32], sizes = [16, 16], strides = [1, 1]} : vector<16x64xf32> to vector<16x16xf32>
    %cst_14 = arith.constant dense<0.000000e+00> : vector<16x16xf32>
    %35 = tpu.matmul %29, %31, %cst_14 {dimension_numbers = #tpu.dot_dimension_numbers<[1], [1], [0], [0], [0, 0, 1, 0], [], []>} : vector<16x16xf32>, vector<16x16xf32>, vector<16x16xf32> -> vector<16x16xf32>
    %cst_15 = arith.constant dense<0.000000e+00> : vector<16x16xf32>
    %36 = tpu.matmul %30, %32, %cst_15 {dimension_numbers = #tpu.dot_dimension_numbers<[1], [1], [0], [0], [0, 0, 1, 0], [], []>} : vector<16x16xf32>, vector<16x16xf32>, vector<16x16xf32> -> vector<16x16xf32>
    %37 = arith.addf %35, %36 : vector<16x16xf32>
    %cst_16 = arith.constant 0.176776692 : f32
    %38 = vector.broadcast %cst_16 : f32 to vector<16x16xf32>
    %39 = arith.mulf %37, %38 : vector<16x16xf32>
    %40 = arith.addf %39, %3 : vector<16x16xf32>
    %cst_17 = arith.constant dense<0xFF800000> : vector<16xf32>
    %41 = vector.multi_reduction <maximumf>, %40, %cst_17 [1] : vector<16x16xf32> to vector<16xf32>
    %42 = vector.shape_cast %41 : vector<16xf32> to vector<16x1xf32>
    %43 = vector.broadcast %42 : vector<16x1xf32> to vector<16x16xf32>
    %44 = arith.subf %40, %43 : vector<16x16xf32>
    %45 = math.exp %44 : vector<16x16xf32>
    %cst_18 = arith.constant dense<0.000000e+00> : vector<16xf32>
    %46 = vector.multi_reduction <add>, %45, %cst_18 [1] : vector<16x16xf32> to vector<16xf32>
    %47 = vector.shape_cast %46 : vector<16xf32> to vector<16x1xf32>
    %48 = tpu.reciprocal %47 {approx = true} : vector<16x1xf32> -> vector<16x1xf32>
    %49 = vector.broadcast %48 : vector<16x1xf32> to vector<16x16xf32>
    %50 = arith.mulf %45, %49 : vector<16x16xf32>
    %cst_19 = arith.constant dense<0.000000e+00> : vector<16x16xf32>
    %51 = tpu.matmul %50, %33, %cst_19 {dimension_numbers = #tpu.dot_dimension_numbers<[1], [0], [0], [1], [0, 0, 1, 1], [], []>} : vector<16x16xf32>, vector<16x16xf32>, vector<16x16xf32> -> vector<16x16xf32>
    %cst_20 = arith.constant dense<0.000000e+00> : vector<16x16xf32>
    %52 = tpu.matmul %50, %34, %cst_20 {dimension_numbers = #tpu.dot_dimension_numbers<[1], [0], [0], [1], [0, 0, 1, 1], [], []>} : vector<16x16xf32>, vector<16x16xf32>, vector<16x16xf32> -> vector<16x16xf32>
    %53 = vector.extract_strided_slice %20 {offsets = [0, 32], sizes = [16, 16], strides = [1, 1]} : vector<16x128xf32> to vector<16x16xf32>
    %54 = vector.extract_strided_slice %20 {offsets = [0, 48], sizes = [16, 16], strides = [1, 1]} : vector<16x128xf32> to vector<16x16xf32>
    %55 = vector.extract_strided_slice %25 {offsets = [0, 0], sizes = [16, 16], strides = [1, 1]} : vector<16x64xf32> to vector<16x16xf32>
    %56 = vector.extract_strided_slice %28 {offsets = [0, 0], sizes = [16, 16], strides = [1, 1]} : vector<16x64xf32> to vector<16x16xf32>
    %57 = vector.extract_strided_slice %25 {offsets = [0, 32], sizes = [16, 16], strides = [1, 1]} : vector<16x64xf32> to vector<16x16xf32>
    %58 = vector.extract_strided_slice %28 {offsets = [0, 32], sizes = [16, 16], strides = [1, 1]} : vector<16x64xf32> to vector<16x16xf32>
    %cst_21 = arith.constant dense<0.000000e+00> : vector<16x16xf32>
    %59 = tpu.matmul %53, %55, %cst_21 {dimension_numbers = #tpu.dot_dimension_numbers<[1], [1], [0], [0], [0, 0, 1, 0], [], []>} : vector<16x16xf32>, vector<16x16xf32>, vector<16x16xf32> -> vector<16x16xf32>
    %cst_22 = arith.constant dense<0.000000e+00> : vector<16x16xf32>
    %60 = tpu.matmul %54, %56, %cst_22 {dimension_numbers = #tpu.dot_dimension_numbers<[1], [1], [0], [0], [0, 0, 1, 0], [], []>} : vector<16x16xf32>, vector<16x16xf32>, vector<16x16xf32> -> vector<16x16xf32>
    %61 = arith.addf %59, %60 : vector<16x16xf32>
    %cst_23 = arith.constant 0.176776692 : f32
    %62 = vector.broadcast %cst_23 : f32 to vector<16x16xf32>
    %63 = arith.mulf %61, %62 : vector<16x16xf32>
    %64 = arith.addf %63, %3 : vector<16x16xf32>
    %cst_24 = arith.constant dense<0xFF800000> : vector<16xf32>
    %65 = vector.multi_reduction <maximumf>, %64, %cst_24 [1] : vector<16x16xf32> to vector<16xf32>
    %66 = vector.shape_cast %65 : vector<16xf32> to vector<16x1xf32>
    %67 = vector.broadcast %66 : vector<16x1xf32> to vector<16x16xf32>
    %68 = arith.subf %64, %67 : vector<16x16xf32>
    %69 = math.exp %68 : vector<16x16xf32>
    %cst_25 = arith.constant dense<0.000000e+00> : vector<16xf32>
    %70 = vector.multi_reduction <add>, %69, %cst_25 [1] : vector<16x16xf32> to vector<16xf32>
    %71 = vector.shape_cast %70 : vector<16xf32> to vector<16x1xf32>
    %72 = tpu.reciprocal %71 {approx = true} : vector<16x1xf32> -> vector<16x1xf32>
    %73 = vector.broadcast %72 : vector<16x1xf32> to vector<16x16xf32>
    %74 = arith.mulf %69, %73 : vector<16x16xf32>
    %cst_26 = arith.constant dense<0.000000e+00> : vector<16x16xf32>
    %75 = tpu.matmul %74, %57, %cst_26 {dimension_numbers = #tpu.dot_dimension_numbers<[1], [0], [0], [1], [0, 0, 1, 1], [], []>} : vector<16x16xf32>, vector<16x16xf32>, vector<16x16xf32> -> vector<16x16xf32>
    %cst_27 = arith.constant dense<0.000000e+00> : vector<16x16xf32>
    %76 = tpu.matmul %74, %58, %cst_27 {dimension_numbers = #tpu.dot_dimension_numbers<[1], [0], [0], [1], [0, 0, 1, 1], [], []>} : vector<16x16xf32>, vector<16x16xf32>, vector<16x16xf32> -> vector<16x16xf32>
    %77 = vector.extract_strided_slice %20 {offsets = [0, 64], sizes = [16, 16], strides = [1, 1]} : vector<16x128xf32> to vector<16x16xf32>
    %78 = vector.extract_strided_slice %20 {offsets = [0, 80], sizes = [16, 16], strides = [1, 1]} : vector<16x128xf32> to vector<16x16xf32>
    %79 = vector.extract_strided_slice %25 {offsets = [0, 16], sizes = [16, 16], strides = [1, 1]} : vector<16x64xf32> to vector<16x16xf32>
    %80 = vector.extract_strided_slice %28 {offsets = [0, 16], sizes = [16, 16], strides = [1, 1]} : vector<16x64xf32> to vector<16x16xf32>
    %81 = vector.extract_strided_slice %25 {offsets = [0, 48], sizes = [16, 16], strides = [1, 1]} : vector<16x64xf32> to vector<16x16xf32>
    %82 = vector.extract_strided_slice %28 {offsets = [0, 48], sizes = [16, 16], strides = [1, 1]} : vector<16x64xf32> to vector<16x16xf32>
    %cst_28 = arith.constant dense<0.000000e+00> : vector<16x16xf32>
    %83 = tpu.matmul %77, %79, %cst_28 {dimension_numbers = #tpu.dot_dimension_numbers<[1], [1], [0], [0], [0, 0, 1, 0], [], []>} : vector<16x16xf32>, vector<16x16xf32>, vector<16x16xf32> -> vector<16x16xf32>
    %cst_29 = arith.constant dense<0.000000e+00> : vector<16x16xf32>
    %84 = tpu.matmul %78, %80, %cst_29 {dimension_numbers = #tpu.dot_dimension_numbers<[1], [1], [0], [0], [0, 0, 1, 0], [], []>} : vector<16x16xf32>, vector<16x16xf32>, vector<16x16xf32> -> vector<16x16xf32>
    %85 = arith.addf %83, %84 : vector<16x16xf32>
    %cst_30 = arith.constant 0.176776692 : f32
    %86 = vector.broadcast %cst_30 : f32 to vector<16x16xf32>
    %87 = arith.mulf %85, %86 : vector<16x16xf32>
    %88 = arith.addf %87, %3 : vector<16x16xf32>
    %cst_31 = arith.constant dense<0xFF800000> : vector<16xf32>
    %89 = vector.multi_reduction <maximumf>, %88, %cst_31 [1] : vector<16x16xf32> to vector<16xf32>
    %90 = vector.shape_cast %89 : vector<16xf32> to vector<16x1xf32>
    %91 = vector.broadcast %90 : vector<16x1xf32> to vector<16x16xf32>
    %92 = arith.subf %88, %91 : vector<16x16xf32>
    %93 = math.exp %92 : vector<16x16xf32>
    %cst_32 = arith.constant dense<0.000000e+00> : vector<16xf32>
    %94 = vector.multi_reduction <add>, %93, %cst_32 [1] : vector<16x16xf32> to vector<16xf32>
    %95 = vector.shape_cast %94 : vector<16xf32> to vector<16x1xf32>
    %96 = tpu.reciprocal %95 {approx = true} : vector<16x1xf32> -> vector<16x1xf32>
    %97 = vector.broadcast %96 : vector<16x1xf32> to vector<16x16xf32>
    %98 = arith.mulf %93, %97 : vector<16x16xf32>
    %cst_33 = arith.constant dense<0.000000e+00> : vector<16x16xf32>
    %99 = tpu.matmul %98, %81, %cst_33 {dimension_numbers = #tpu.dot_dimension_numbers<[1], [0], [0], [1], [0, 0, 1, 1], [], []>} : vector<16x16xf32>, vector<16x16xf32>, vector<16x16xf32> -> vector<16x16xf32>
    %cst_34 = arith.constant dense<0.000000e+00> : vector<16x16xf32>
    %100 = tpu.matmul %98, %82, %cst_34 {dimension_numbers = #tpu.dot_dimension_numbers<[1], [0], [0], [1], [0, 0, 1, 1], [], []>} : vector<16x16xf32>, vector<16x16xf32>, vector<16x16xf32> -> vector<16x16xf32>
    %101 = vector.extract_strided_slice %20 {offsets = [0, 96], sizes = [16, 16], strides = [1, 1]} : vector<16x128xf32> to vector<16x16xf32>
    %102 = vector.extract_strided_slice %20 {offsets = [0, 112], sizes = [16, 16], strides = [1, 1]} : vector<16x128xf32> to vector<16x16xf32>
    %103 = vector.extract_strided_slice %25 {offsets = [0, 16], sizes = [16, 16], strides = [1, 1]} : vector<16x64xf32> to vector<16x16xf32>
    %104 = vector.extract_strided_slice %28 {offsets = [0, 16], sizes = [16, 16], strides = [1, 1]} : vector<16x64xf32> to vector<16x16xf32>
    %105 = vector.extract_strided_slice %25 {offsets = [0, 48], sizes = [16, 16], strides = [1, 1]} : vector<16x64xf32> to vector<16x16xf32>
    %106 = vector.extract_strided_slice %28 {offsets = [0, 48], sizes = [16, 16], strides = [1, 1]} : vector<16x64xf32> to vector<16x16xf32>
    %cst_35 = arith.constant dense<0.000000e+00> : vector<16x16xf32>
    %107 = tpu.matmul %101, %103, %cst_35 {dimension_numbers = #tpu.dot_dimension_numbers<[1], [1], [0], [0], [0, 0, 1, 0], [], []>} : vector<16x16xf32>, vector<16x16xf32>, vector<16x16xf32> -> vector<16x16xf32>
    %cst_36 = arith.constant dense<0.000000e+00> : vector<16x16xf32>
    %108 = tpu.matmul %102, %104, %cst_36 {dimension_numbers = #tpu.dot_dimension_numbers<[1], [1], [0], [0], [0, 0, 1, 0], [], []>} : vector<16x16xf32>, vector<16x16xf32>, vector<16x16xf32> -> vector<16x16xf32>
    %109 = arith.addf %107, %108 : vector<16x16xf32>
    %cst_37 = arith.constant 0.176776692 : f32
    %110 = vector.broadcast %cst_37 : f32 to vector<16x16xf32>
    %111 = arith.mulf %109, %110 : vector<16x16xf32>
    %112 = arith.addf %111, %3 : vector<16x16xf32>
    %cst_38 = arith.constant dense<0xFF800000> : vector<16xf32>
    %113 = vector.multi_reduction <maximumf>, %112, %cst_38 [1] : vector<16x16xf32> to vector<16xf32>
    %114 = vector.shape_cast %113 : vector<16xf32> to vector<16x1xf32>
    %115 = vector.broadcast %114 : vector<16x1xf32> to vector<16x16xf32>
    %116 = arith.subf %112, %115 : vector<16x16xf32>
    %117 = math.exp %116 : vector<16x16xf32>
    %cst_39 = arith.constant dense<0.000000e+00> : vector<16xf32>
    %118 = vector.multi_reduction <add>, %117, %cst_39 [1] : vector<16x16xf32> to vector<16xf32>
    %119 = vector.shape_cast %118 : vector<16xf32> to vector<16x1xf32>
    %120 = tpu.reciprocal %119 {approx = true} : vector<16x1xf32> -> vector<16x1xf32>
    %121 = vector.broadcast %120 : vector<16x1xf32> to vector<16x16xf32>
    %122 = arith.mulf %117, %121 : vector<16x16xf32>
    %cst_40 = arith.constant dense<0.000000e+00> : vector<16x16xf32>
    %123 = tpu.matmul %122, %105, %cst_40 {dimension_numbers = #tpu.dot_dimension_numbers<[1], [0], [0], [1], [0, 0, 1, 1], [], []>} : vector<16x16xf32>, vector<16x16xf32>, vector<16x16xf32> -> vector<16x16xf32>
    %cst_41 = arith.constant dense<0.000000e+00> : vector<16x16xf32>
    %124 = tpu.matmul %122, %106, %cst_41 {dimension_numbers = #tpu.dot_dimension_numbers<[1], [0], [0], [1], [0, 0, 1, 1], [], []>} : vector<16x16xf32>, vector<16x16xf32>, vector<16x16xf32> -> vector<16x16xf32>
    %125 = tpu.concatenate %51, %52, %75, %76, %99, %100, %123, %124 in 1 : vector<16x16xf32>, vector<16x16xf32>, vector<16x16xf32>, vector<16x16xf32>, vector<16x16xf32>, vector<16x16xf32>, vector<16x16xf32>, vector<16x16xf32> -> vector<16x128xf32>
    %126 = arith.truncf %125 : vector<16x128xf32> to vector<16x128xbf16>
    %c0_42 = arith.constant 0 : index
    %c0_43 = arith.constant 0 : index
    %127 = vector.load %arg2[%c0_42, %c0_43] : memref<128x128xbf16, #tpu.memory_space<vmem>>, vector<128x128xbf16>
    %cst_44 = arith.constant dense<0.000000e+00> : vector<16x128xf32>
    %128 = tpu.matmul %126, %127, %cst_44 {dimension_numbers = #tpu.dot_dimension_numbers<[1], [0], [0], [1], [0, 0, 1, 1], [], []>} : vector<16x128xbf16>, vector<128x128xbf16>, vector<16x128xf32> -> vector<16x128xf32>
    %129 = arith.addf %0, %128 : vector<16x128xf32>
    %c0_45 = arith.constant 0 : index
    %c0_46 = arith.constant 0 : index
    %130 = vector.load %arg6[%c0_45, %c0_46] : memref<1x128xf32, #tpu.memory_space<vmem>>, vector<1x128xf32>
    %131 = arith.mulf %129, %129 : vector<16x128xf32>
    %cst_47 = arith.constant dense<0.000000e+00> : vector<16xf32>
    %132 = vector.multi_reduction <add>, %131, %cst_47 [1] : vector<16x128xf32> to vector<16xf32>
    %133 = vector.shape_cast %132 : vector<16xf32> to vector<16x1xf32>
    %cst_48 = arith.constant 1.280000e+02 : f32
    %134 = vector.broadcast %cst_48 : f32 to vector<16x1xf32>
    %135 = arith.divf %133, %134 : vector<16x1xf32>
    %cst_49 = arith.constant 9.99999974E-6 : f32
    %136 = vector.broadcast %cst_49 : f32 to vector<16x1xf32>
    %137 = arith.addf %135, %136 : vector<16x1xf32>
    %138 = math.rsqrt %137 : vector<16x1xf32>
    %139 = vector.broadcast %138 : vector<16x1xf32> to vector<16x128xf32>
    %140 = arith.mulf %129, %139 : vector<16x128xf32>
    %141 = vector.broadcast %130 : vector<1x128xf32> to vector<16x128xf32>
    %142 = arith.mulf %141, %140 : vector<16x128xf32>
    %143 = arith.truncf %142 : vector<16x128xf32> to vector<16x128xbf16>
    %c0_50 = arith.constant 0 : index
    %c0_51 = arith.constant 0 : index
    %144 = vector.load %arg3[%c0_50, %c0_51] : memref<128x1024xbf16, #tpu.memory_space<vmem>>, vector<128x1024xbf16>
    %cst_52 = arith.constant dense<0.000000e+00> : vector<16x1024xf32>
    %145 = tpu.matmul %143, %144, %cst_52 {dimension_numbers = #tpu.dot_dimension_numbers<[1], [0], [0], [1], [0, 0, 1, 1], [], []>} : vector<16x128xbf16>, vector<128x1024xbf16>, vector<16x1024xf32> -> vector<16x1024xf32>
    %146 = vector.extract_strided_slice %145 {offsets = [0, 0], sizes = [16, 512], strides = [1, 1]} : vector<16x1024xf32> to vector<16x512xf32>
    %147 = vector.extract_strided_slice %145 {offsets = [0, 512], sizes = [16, 512], strides = [1, 1]} : vector<16x1024xf32> to vector<16x512xf32>
    %148 = arith.negf %146 : vector<16x512xf32>
    %149 = math.exp %148 : vector<16x512xf32>
    %cst_53 = arith.constant 1.000000e+00 : f32
    %150 = vector.broadcast %cst_53 : f32 to vector<16x512xf32>
    %151 = arith.addf %150, %149 : vector<16x512xf32>
    %152 = arith.divf %150, %151 : vector<16x512xf32>
    %153 = arith.mulf %146, %152 : vector<16x512xf32>
    %154 = arith.mulf %153, %147 : vector<16x512xf32>
    %155 = arith.truncf %154 : vector<16x512xf32> to vector<16x512xbf16>
    %c0_54 = arith.constant 0 : index
    %c0_55 = arith.constant 0 : index
    %156 = vector.load %arg4[%c0_54, %c0_55] : memref<512x128xbf16, #tpu.memory_space<vmem>>, vector<512x128xbf16>
    %cst_56 = arith.constant dense<0.000000e+00> : vector<16x128xf32>
    %157 = tpu.matmul %155, %156, %cst_56 {dimension_numbers = #tpu.dot_dimension_numbers<[1], [0], [0], [1], [0, 0, 1, 1], [], []>} : vector<16x512xbf16>, vector<512x128xbf16>, vector<16x128xf32> -> vector<16x128xf32>
    %158 = arith.addf %129, %157 : vector<16x128xf32>
    %c0_57 = arith.constant 0 : index
    %c0_58 = arith.constant 0 : index
    %159 = vector.load %arg10[%c0_57, %c0_58] : memref<16x128xf32, #tpu.memory_space<vmem>>, vector<16x128xf32>
    tpu.vector_store %arg10[%c0_57, %c0_58], %158 {strides = array<i32>} : memref<16x128xf32, #tpu.memory_space<vmem>>, vector<16x128xf32>,
    return
  }
}

</mosaic_0001>

<bundles_post_ra>
// kernel: tpu_custom_call.1
= control target key start
LH: loop header
LB: loop body
LE: loop exit
PB: predicated region body
PF: predicated region fallthrough
CT: control target
= control target key end

     0   :  { %15 = vsyncpa [#allocation3], 0  ;;  %s4275_s0 = inlined_call_operand.hbm [shape: f32[16,128], index: 0, kind: input, shape index: {}]   ;;  %s4276_s1 = inlined_call_operand.hbm [shape: bf16[128,256], index: 1, kind: input, shape index: {}]   ;;  %s4277_s2 = inlined_call_operand.hbm [shape: bf16[128,128], index: 2, kind: input, shape index: {}]   ;;  %s4278_s3 = inlined_call_operand.hbm [shape: bf16[128,1024], index: 3, kind: input, shape index: {}]   ;;  %s4279_s4 = inlined_call_operand.hbm [shape: bf16[512,128], index: 4, kind: input, shape index: {}]   ;;  %s4280_s5 = inlined_call_operand.hbm [shape: f32[1,128], index: 5, kind: input, shape index: {}]   ;;  %s4281_s6 = inlined_call_operand.hbm [shape: f32[1,128], index: 6, kind: input, shape index: {}]   ;;  %s4282_s7 = inlined_call_operand.hbm [shape: f32[16,64], index: 7, kind: input, shape index: {}]   ;;  %s4283_s8 = inlined_call_operand.hbm [shape: f32[16,64], index: 8, kind: input, shape index: {}]   ;;  %s4284_s9 = inlined_call_operand.vmem [shape: f32[16,16], index: 9, kind: input, shape index: {}]   ;;  %s4285_s10 = inlined_call_operand.hbm [shape: f32[16,128], index: 10, kind: output, shape index: {}]  }
   0x1   :  { %16 = vsyncpa [#allocation6], 0 }
   0x2   :  { %17 = vsyncpa [#allocation9], 0 }
   0x3   :  { %18 = vsyncpa [#allocation12], 0 }
   0x4   :  { %19 = vsyncpa [#allocation15], 0 }
   0x5   :  { %20 = vsyncpa [#allocation4], 0  ;;  %s3845_s13 = smov [#allocation5]   ;;  %s3846_s15 = smov [#allocation8]  }
   0x6   :  { %s38_s14 = sshll.u32 %s3845_s13, 4  ;;  %s62_s16 = sshll.u32 %s3846_s15, 4  ;;  %s39_s14 = int_to_ptr.vmem [resolvable:$true] %s38_s14  ;;  %s63_s16 = int_to_ptr.vmem [resolvable:$true] %s62_s16 }
   0x7   :  { %s3641_s17 = scalar_lea.vmem %s39_s14, 2048  ;;  %p3646_p1 = scmp.lt.s32.totalorder %s39_s14, %s39_s14 }
   0x8   :  { %p3642_p0 = scmp.ne.s32.totalorder %s39_s14, %s3641_s17  ;;  %p3647_p2 = scmp.lt.s32.totalorder %s3641_s17, %s3641_s17 }
   0xa   :  { %p3648_p3 = por %p3647_p2, %p3646_p1 }
   0xc   :  { %p3649_p4 = pnand %p3648_p3, %p3642_p0 }
   0xe   :  { %3652 = shalt.err (!%p3649_p4)
}
   0xf   :  { %s3847_s18 = smov 128   ;;  %s3848_s19 = smov 8  }
  0x10   :  { %44 = dma.hbm_to_vmem [thread:$0]  %s4276_s1, 2048, %s39_s14, [#allocation6], %s3847_s18, %s3847_s18, %s3848_s19  }
  0x11   :  { %s3661_s22 = scalar_lea.vmem %s63_s16, 8192  ;;  %p3666_p6 = scmp.lt.s32.totalorder %s63_s16, %s63_s16 }
  0x12   :  { %p3662_p5 = scmp.ne.s32.totalorder %s63_s16, %s3661_s22  ;;  %p3667_p7 = scmp.lt.s32.totalorder %s3661_s22, %s3661_s22 }
  0x14   :  { %p3668_p8 = por %p3667_p7, %p3666_p6 }
  0x16   :  { %p3669_p9 = pnand %p3668_p8, %p3662_p5 }
  0x18   :  { %3672 = shalt.err (!%p3669_p9)
}
  0x19   :  { %s3849_s23 = smov 512   ;;  %s3850_s24 = smov 32  }
  0x1a   :  { %68 = dma.hbm_to_vmem [thread:$0]  %s4278_s3, 8192, %s63_s16, [#allocation9], %s3849_s23, %s3849_s23, %s3850_s24  }
  0x1b   :  { %s3851_s27 = smov [#allocation11]   ;;  %s3852_s29 = smov [#allocation14]  }
  0x1c   :  { %s87_s28 = sshll.u32 %s3851_s27, 4  ;;  %s106_s30 = sshll.u32 %s3852_s29, 4  ;;  %s88_s28 = int_to_ptr.vmem [resolvable:$true] %s87_s28  ;;  %s107_s30 = int_to_ptr.vmem [resolvable:$true] %s106_s30 }
  0x1d   :  { %s3681_s1 = scalar_lea.vmem %s88_s28, 16  ;;  %s3685_s11 = scalar_lea.vmem %s88_s28, 32 }
  0x1e   :  { %p3682_p10 = scmp.ne.s32.totalorder %s88_s28, %s3681_s1  ;;  %p3686_p11 = scmp.lt.s32.totalorder %s88_s28, %s88_s28 }
  0x1f   :  { %p3687_p12 = scmp.lt.s32.totalorder %s3685_s11, %s3681_s1 }
  0x21   :  { %p3688_p13 = por %p3687_p12, %p3686_p11 }
  0x23   :  { %p3689_p0 = pnand %p3688_p13, %p3682_p10 }
  0x25   :  { %3692 = shalt.err (!%p3689_p0)
}
  0x26   :  { %90 = dma.hbm_to_vmem [thread:$0]  %s4280_s5, 16, %s88_s28, [#allocation12]  }
  0x27   :  { %s3701_s14 = scalar_lea.vmem %s107_s30, 256  ;;  %p3706_p2 = scmp.lt.s32.totalorder %s107_s30, %s107_s30 }
  0x28   :  { %p3702_p1 = scmp.ne.s32.totalorder %s107_s30, %s3701_s14  ;;  %p3707_p3 = scmp.lt.s32.totalorder %s3701_s14, %s3701_s14 }
  0x2a   :  { %p3708_p4 = por %p3707_p3, %p3706_p2 }
  0x2c   :  { %p3709_p5 = pnand %p3708_p4, %p3702_p1 }
  0x2e   :  { %3712 = shalt.err (!%p3709_p5)
}
  0x2f   :  { %112 = dma.hbm_to_vmem [thread:$0]  %s4282_s7, 256, %s107_s30, [#allocation15], %s3847_s18, %s3847_s18, %s3848_s19  }
  0x30   :  { %s3853_s16 = smov [#allocation2]   ;;  %s3854_s20 = smov [#allocation7]  }
  0x31   :  { %s26_s17 = sshll.u32 %s3853_s16, 4  ;;  %s50_s21 = sshll.u32 %s3854_s20, 4  ;;  %s27_s17 = int_to_ptr.vmem [resolvable:$true] %s26_s17  ;;  %s51_s21 = int_to_ptr.vmem [resolvable:$true] %s50_s21 }
  0x32   :  { %s3721_s5 = scalar_lea.vmem %s27_s17, 256  ;;  %p3726_p7 = scmp.lt.s32.totalorder %s27_s17, %s27_s17 }
  0x33   :  { %p3722_p6 = scmp.ne.s32.totalorder %s27_s17, %s3721_s5  ;;  %p3727_p8 = scmp.lt.s32.totalorder %s3721_s5, %s3721_s5 }
  0x35   :  { %p3728_p9 = por %p3727_p8, %p3726_p7 }
  0x37   :  { %p3729_p10 = pnand %p3728_p9, %p3722_p6 }
  0x39   :  { %3732 = shalt.err (!%p3729_p10)
}
  0x3a   :  { %32 = dma.hbm_to_vmem [thread:$0]  %s4275_s0, 256, %s27_s17, [#allocation3], %s3847_s18, %s3847_s18, %s3848_s19  }
  0x3b   :  { %s3741_s7 = scalar_lea.vmem %s51_s21, 1024  ;;  %p3746_p12 = scmp.lt.s32.totalorder %s51_s21, %s51_s21 }
  0x3c   :  { %p3742_p11 = scmp.ne.s32.totalorder %s51_s21, %s3741_s7  ;;  %p3747_p13 = scmp.lt.s32.totalorder %s3741_s7, %s3741_s7 }
  0x3e   :  { %p3748_p0 = por %p3747_p13, %p3746_p12 }
  0x40   :  { %p3749_p1 = pnand %p3748_p0, %p3742_p11 }
  0x42   :  { %3752 = shalt.err (!%p3749_p1)
}
  0x43   :  { %s3855_s25 = smov 64   ;;  %s3856_s26 = smov 4  }
  0x44   :  { %56 = dma.hbm_to_vmem [thread:$0]  %s4277_s2, 1024, %s51_s21, [#allocation6], %s3855_s25, %s3855_s25, %s3856_s26  }
  0x45   :  { %s3857_s29 = smov [#allocation10]   ;;  %s3858_s1 = smov [#allocation13]  }
  0x46   :  { %s74_s30 = sshll.u32 %s3857_s29, 4  ;;  %s97_s11 = sshll.u32 %s3858_s1, 4  ;;  %s75_s30 = int_to_ptr.vmem [resolvable:$true] %s74_s30  ;;  %s98_s11 = int_to_ptr.vmem [resolvable:$true] %s97_s11 }
  0x47   :  { %s3761_s0 = scalar_lea.vmem %s75_s30, 4096  ;;  %p3766_p3 = scmp.lt.s32.totalorder %s75_s30, %s75_s30 }
  0x48   :  { %p3762_p2 = scmp.ne.s32.totalorder %s75_s30, %s3761_s0  ;;  %p3767_p4 = scmp.lt.s32.totalorder %s3761_s0, %s3761_s0 }
  0x4a   :  { %p3768_p5 = por %p3767_p4, %p3766_p3 }
  0x4c   :  { %p3769_p6 = pnand %p3768_p5, %p3762_p2 }
  0x4e   :  { %3772 = shalt.err (!%p3769_p6)
}
  0x4f   :  { %80 = dma.hbm_to_vmem [thread:$0]  %s4279_s4, 4096, %s75_s30, [#allocation9], %s3855_s25, %s3855_s25, %s3856_s26  }
  0x50   :  { %s3781_s2 = scalar_lea.vmem %s98_s11, 16  ;;  %s3785_s14 = scalar_lea.vmem %s98_s11, 32 }
  0x51   :  { %p3782_p7 = scmp.ne.s32.totalorder %s98_s11, %s3781_s2  ;;  %p3786_p8 = scmp.lt.s32.totalorder %s98_s11, %s98_s11 }
  0x52   :  { %p3787_p9 = scmp.lt.s32.totalorder %s3785_s14, %s3781_s2 }
  0x54   :  { %p3788_p10 = por %p3787_p9, %p3786_p8 }
  0x56   :  { %p3789_p11 = pnand %p3788_p10, %p3782_p7 }
  0x58   :  { %3792 = shalt.err (!%p3789_p11)
}
  0x59   :  { %100 = dma.hbm_to_vmem [thread:$0]  %s4281_s6, 16, %s98_s11, [#allocation12]  }
  0x5a   :  { %s3859_s16 = smov [#allocation16]  }
  0x5b   :  { %s118_s17 = sshll.u32 %s3859_s16, 4  ;;  %s119_s17 = int_to_ptr.vmem [resolvable:$true] %s118_s17 }
  0x5c   :  { %s3801_s20 = scalar_lea.vmem %s119_s17, 256  ;;  %p3806_p13 = scmp.lt.s32.totalorder %s119_s17, %s119_s17 }
  0x5d   :  { %p3802_p12 = scmp.ne.s32.totalorder %s119_s17, %s3801_s20  ;;  %p3807_p0 = scmp.lt.s32.totalorder %s3801_s20, %s3801_s20 }
  0x5f   :  { %p3808_p1 = por %p3807_p0, %p3806_p13 }
  0x61   :  { %p3809_p2 = pnand %p3808_p1, %p3802_p12 }
  0x63   :  { %3812 = shalt.err (!%p3809_p2)
}
  0x64   :  { %124 = dma.hbm_to_vmem [thread:$0]  %s4283_s8, 256, %s119_s17, [#allocation15], %s3847_s18, %s3847_s18, %s3848_s19  }
  0x65   :  { %3833 = dma.done.wait [#allocation3], 256  }
  0x66   :  { %3834 = vsyncadd [#allocation3], 4294967040 }
  0x67   :  { %3835 = dma.done.wait [#allocation6], 3072  }
  0x68   :  { %3836 = vsyncadd [#allocation6], 4294964224 }
  0x69   :  { %3837 = dma.done.wait [#allocation9], 12288  }
  0x6a   :  { %3838 = vsyncadd [#allocation9], 4294955008 }
  0x6b   :  { %3839 = dma.done.wait [#allocation12], 32  }
  0x6c   :  { %3840 = vsyncadd [#allocation12], 4294967264 }
  0x6d   :  { %3841 = dma.done.wait [#allocation15], 512  }
  0x6e   :  { %3842 = vsyncadd [#allocation15], 4294966784  ;;  %v155_v0 = vld [vmem:[#allocation2] sm:$0xff]  ;;  %v156_v1 = vld [vmem:[#allocation2 + $0x8] sm:$0xff]  ;;  %v3860_v16 = vmov 0   ;;  %s3861_s6 = smov 112  }
  0x6f   :  { %v164_v2 = vmul.f32 %v155_v0, %v155_v0  ;;  %v3495_v3 = vld [vmem:[#allocation5 + $0x74] ss:$8 sps:$4 sm:$0xff]   ;;  %v3497_v4 = vld [vmem:[#allocation5 + $0x70] ss:$8 sps:$4 sm:$0xff]   ;;  %v165_v5 = vmul.f32 %v156_v1, %v156_v1  ;;  %v3498_v6 = vld [vmem:[#allocation5 + $0x64] ss:$8 sps:$4 sm:$0xff]   ;;  %316 = vmatprep.mubr.bf16.mxu0 %v3860_v16 }
  0x70   :  { %284 = vmatprep.subr.bf16.mxu0 %v3495_v3  ;;  %v3500_v7 = vld [vmem:[#allocation5 + $0x60] ss:$8 sps:$4 sm:$0xff]   ;;  %v3501_v8 = vld [vmem:[#allocation5 + $0x54] ss:$8 sps:$4 sm:$0xff]   ;;  %v3503_v9 = vld [vmem:[#allocation5 + $0x50] ss:$8 sps:$4 sm:$0xff]  }
  0x71   :  { %166 = vadd.xlane.f32.xlu0 %v164_v2  ;;  %285 = vmatpush1.bf16.msra.mxu0 %v3497_v4  ;;  %v3504_v10 = vld [vmem:[#allocation5 + $0x44] ss:$8 sps:$4 sm:$0xff]   ;;  %v3506_v11 = vld [vmem:[#allocation5 + $0x40] ss:$8 sps:$4 sm:$0xff]   ;;  %v3507_v12 = vld [vmem:[#allocation5 + $0x34] ss:$8 sps:$4 sm:$0xff]  }
  0x72   :  { %286 = vmatprep.subr.bf16.mxu0 %v3498_v6  ;;  %v3509_v13 = vld [vmem:[#allocation5 + $0x30] ss:$8 sps:$4 sm:$0xff]   ;;  %v3510_v14 = vld [vmem:[#allocation5 + $0x24] ss:$8 sps:$4 sm:$0xff]   ;;  %v3512_v15 = vld [vmem:[#allocation5 + $0x20] ss:$8 sps:$4 sm:$0xff]  }
  0x73   :  { %v3513_v17 = vld [vmem:[#allocation5 + $0x14] ss:$8 sps:$4 sm:$0xff]   ;;  %v3515_v18 = vld [vmem:[#allocation5 + $0x10] ss:$8 sps:$4 sm:$0xff]   ;;  %v3516_v19 = vld [vmem:[#allocation5 + $0x4] ss:$8 sps:$4 sm:$0xff]  }
  0x74   :  { %v3518_v20 = vld [vmem:[#allocation5] ss:$8 sps:$4 sm:$0xff]   ;;  %v158_v21 = vld [vmem:[#allocation14 + $0x8] sm:$0xff]  ;;  %v159_v24 = vld [vmem:[#allocation16] sm:$0xff]  ;;  %vm377_vm0 = vcmask 130048   ;;  %s3862_s7 = smov 96  }
  0x75   :  { %168 = vadd.xlane.f32.xlu0 %v165_v5  ;;  %287 = vmatpush1.bf16.msra.mxu0 %v3500_v7  ;;  %v160_v22 = vld [vmem:[#allocation16 + $0x8] sm:$0xff]  ;;  %v157_v23 = vld [vmem:[#allocation14] sm:$0xff]  ;;  %s3864_s26 = smov 48   ;;  %s3865_s27 = smov 16   ;;  %vm3867_vm1 = vmmov 0   ;;  %vm1872_vm2 = vcmask 261120  }
  0x76   :  { %288 = vmatprep.subr.bf16.mxu0 %v3501_v8  ;;  %355 = vrot.lane.b32.xlu1 %v158_v21, %s3855_s25  ;;  %v3009_v34 = vld [vmem:[#allocation11] ss:$0 sm:$0xff]  ;;  %v4018_v6 = vld [vmem:[%s4284_s9 + $0x8] sm:$0xff]  ;;  %vm1875_vm3 = vcmask 392192   ;;  %vm1878_vm4 = vcmask 523264   ;;  %vm1881_vm5 = vcmask 654336  }
  0x77   :  { %vm1884_vm6 = vcmask 785408   ;;  %vm1887_vm7 = vcmask 916480  }
  0x79   :  { %289 = vmatpush1.bf16.msra.mxu0 %v3503_v9  ;;  %v4023_v9 = vld [vmem:[%s4284_s9] sm:$0xff]  ;;  %s3863_s9 = smov 80  }
  0x7a   :  { %290 = vmatprep.subr.bf16.mxu0 %v3504_v10  ;;  %353 = vrot.lane.b32.xlu1 %v157_v23, %s3855_s25 }
  0x7d   :  { %291 = vmatpush1.bf16.msra.mxu0 %v3506_v11 }
  0x7e   :  { %292 = vmatprep.subr.bf16.mxu0 %v3507_v12  ;;  %331 = vrot.lane.b32.xlu1 %v159_v24, %s3855_s25 }
  0x81   :  { %293 = vmatpush1.bf16.msra.mxu0 %v3509_v13 }
  0x82   :  { %294 = vmatprep.subr.bf16.mxu0 %v3510_v14 }
  0x85   :  { %295 = vmatpush1.bf16.msra.mxu0 %v3512_v15 }
  0x86   :  { %296 = vmatprep.subr.bf16.mxu0 %v3513_v17 }
  0x89   :  { %297 = vmatpush1.bf16.msra.mxu0 %v3515_v18 }
  0x8a   :  { %298 = vmatprep.subr.bf16.mxu0 %v3516_v19 }
  0x8b   :  { %333 = vrot.lane.b32.xlu0 %v160_v22, %s3855_s25 }
  0x8d   :  { %299 = vmatpush1.bf16.msra.mxu0 %v3518_v20 }
  0xe8   :  { %v356_v39 = vpop.permute.xlu1 %355 }
  0xec   :  { %v354_v40 = vpop.permute.xlu1 %353 }
  0xf0   :  { %v332_v42 = vpop.permute.xlu1 %331 }
  0xfa   :  { %v167_v25 = vpop.xlane.xlu0 %166 }
  0xfb   :  { %v171_v26 = vmul.f32 0.0078125, %v167_v25 }
  0xfd   :  { %v173_v27 = vadd.f32 1e-05, %v171_v26 }
  0xfe   :  { %v169_v28 = vpop.xlane.xlu0 %168 }
  0xff   :  { %3559 = vrsqrt.f32 %v173_v27  ;;  %v172_v29 = vmul.f32 0.0078125, %v169_v28 }
 0x101   :  { %v174_v30 = vadd.f32 1e-05, %v172_v29 }
 0x102   :  { %v334_v49 = vpop.permute.xlu0 %333 }
 0x103   :  { %3561 = vrsqrt.f32 %v174_v30 }
 0x10c   :  { %v3560_v31 = vpop.eup %3559 }
 0x10d   :  { %v177_v32 = vmul.f32 %v3560_v31, %v155_v0 }
 0x10f   :  { %v185_v36 = vmul.f32 %v3009_v34, %v177_v32 }
 0x110   :  { %v3562_v33 = vpop.eup %3561 }
 0x111   :  { %v178_v35 = vmul.f32 %v3562_v33, %v156_v1 }
 0x113   :  { %v186_v37 = vmul.f32 %v3009_v34, %v178_v35 }
 0x115   :  { %v187_v38 = vpack.c.bf16 %v186_v37, %v185_v36 }
 0x117   :  { %317 = vmatmul.mubr.bf16.vlgmr.msra.gmra.mxu0 %v187_v38 }
 0x1d7   :  { %v3973_v41 = vpop.f32.mrf.mxu0 }
 0x1d9   :  { %v320_v43 = vpop.f32.mrf.mxu0 }
 0x1da   :  { %v359_v44 = vmul.f32 %v354_v40, %v320_v43  ;;  %v337_v45 = vmul.f32 %v332_v42, %v320_v43  ;;  %v349_v54 = vmul.f32 %v320_v43, %v159_v24  ;;  %v327_v62 = vmul.f32 %v320_v43, %v157_v23 }
 0x1db   :  { %v3975_v46 = vpop.f32.mrf.mxu0 }
 0x1dc   :  { %363 = vrot.lane.b32.xlu1 %v359_v44, %s3855_s25  ;;  %341 = vrot.lane.b32.xlu0 %v337_v45, %s3855_s25 }
 0x1dd   :  { %v324_v47 = vpop.f32.mrf.mxu0 }
 0x1de   :  { %v360_v48 = vmul.f32 %v356_v39, %v324_v47  ;;  %v338_v50 = vmul.f32 %v334_v49, %v324_v47  ;;  %v350_v52 = vmul.f32 %v324_v47, %v160_v22  ;;  %v328_v58 = vmul.f32 %v324_v47, %v158_v21 }
 0x1e0   :  { %365 = vrot.lane.b32.xlu1 %v360_v48, %s3855_s25 }
 0x1e4   :  { %373 = vrot.lane.b32.xlu1 %v3973_v41, %s3861_s6 }
 0x1e8   :  { %343 = vrot.lane.b32.xlu1 %v338_v50, %s3855_s25 }
 0x1ec   :  { %375 = vrot.lane.b32.xlu1 %v3975_v46, %s3861_s6 }
 0x24e   :  { %v364_v51 = vpop.permute.xlu1 %363  ;;  %v342_v61 = vpop.permute.xlu0 %341 }
 0x24f   :  { %v3987_v56 = vadd.f32 %v364_v51, %v349_v54  ;;  %v4002_v0 = vsub.f32 %v327_v62, %v342_v61 }
 0x252   :  { %v366_v53 = vpop.permute.xlu1 %365 }
 0x253   :  { %v3985_v55 = vadd.f32 %v366_v53, %v350_v52 }
 0x255   :  { %3304 = vmatprep.subr.msk.mxu1 %vm377_vm0, %v3985_v55 }
 0x256   :  { %v374_v57 = vpop.permute.xlu1 %373  ;;  %3305 = vmatpush3.xpose.msk.msra.mxu1 %vm377_vm0, %v3985_v55 }
 0x257   :  { %3306 = vmatprep.subr.msk.mxu1 %vm377_vm0, %v3987_v56  ;;  %3308 = vmatprep.mubr.msk.f32.mxu1 %vm377_vm0, %v374_v57 }
 0x25a   :  { %3307 = vmatpush3.xpose.msk.msra.mxu1 %vm377_vm0, %v3987_v56  ;;  %v344_v59 = vpop.permute.xlu1 %343 }
 0x25b   :  { %v3998_v60 = vsub.f32 %v328_v58, %v344_v59 }
 0x25d   :  { %3311 = vmatprep.subr.msk.mxu1 %vm377_vm0, %v3998_v60 }
 0x25e   :  { %v376_v63 = vpop.permute.xlu1 %375 }
 0x25f   :  { %3309 = vmatmul.mubr.msk.f32.vlgmr.msra.gmra.mxu1 %vm377_vm0, %v376_v63 }
 0x260   :  { %3312 = vmatpush3.xpose.msk.msra.mxu1 %vm377_vm0, %v3998_v60  ;;  %3315 = vmatprep.mubr.msk.f32.mxu1 %vm377_vm0, %v3973_v41 }
 0x261   :  { %3313 = vmatprep.subr.msk.mxu1 %vm377_vm0, %v4002_v0 }
 0x264   :  { %3314 = vmatpush3.xpose.msk.msra.mxu1 %vm377_vm0, %v4002_v0 }
 0x267   :  { %3316 = vmatmul.mubr.msk.f32.vlgmr.msra.gmra.mxu1 %vm377_vm0, %v3975_v46 }
 0x31f   :  { %v3310_v1 = vpop.f32.mrf.mxu1 }
 0x321   :  { %v454_v2 = vpop.f32.mrf.mxu1 }
 0x327   :  { %v3317_v3 = vpop.f32.mrf.mxu1 }
 0x328   :  { %v545_v4 = vadd.f32 %v3317_v3, %v3310_v1 }
 0x329   :  { %v539_v5 = vpop.f32.mrf.mxu1 }
 0x32a   :  { %v549_v7 = vmul.f32 0.17677669, %v545_v4  ;;  %v540_v8 = vadd.f32 %v539_v5, %v454_v2 }
 0x32c   :  { %v548_v10 = vmul.f32 0.17677669, %v540_v8  ;;  %v551_v11 = vadd.f32 %v549_v7, %v4018_v6 }
 0x32e   :  { %v555_v12 = vsel %vm377_vm0, %v551_v11, -inf  ;;  %v550_v13 = vadd.f32 %v548_v10, %v4023_v9 }
 0x32f   :  { %556 = vmax.xlane.f32.xlu0 %v555_v12 }
 0x330   :  { %v552_v14 = vsel %vm377_vm0, %v550_v13, -inf }
 0x331   :  { %553 = vmax.xlane.f32.xlu1 %v552_v14 }
 0x342   :  { %574 = vrot.lane.b32.xlu1 %v4002_v0, %s3862_s7 }
 0x345   :  { %576 = vrot.lane.b32.xlu0 %v3998_v60, %s3862_s7 }
 0x3b8   :  { %v557_v15 = vpop.xlane.xlu0 %556 }
 0x3b9   :  { %v559_v17 = vsub.f32 %v551_v11, %v557_v15 }
 0x3ba   :  { %v554_v18 = vpop.xlane.xlu1 %553 }
 0x3bb   :  { %v562_v19 = vmul.f32 1.442695, %v559_v17  ;;  %v558_v20 = vsub.f32 %v550_v13, %v554_v18 }
 0x3bc   :  { %v577_v21 = vpop.permute.xlu0 %576 }
 0x3bd   :  { %3563 = vpow2.f32 %v562_v19  ;;  %v560_v22 = vmul.f32 1.442695, %v558_v20  ;;  %3318 = vmatprep.subr.mxu1 %v577_v21 }
 0x3be   :  { %3319 = vmatpush3.msra.mxu1 %v577_v21  ;;  %v575_v23 = vpop.permute.xlu1 %574 }
 0x3bf   :  { %3565 = vpow2.f32 %v560_v22  ;;  %3320 = vmatprep.subr.mxu1 %v575_v23 }
 0x3c0   :  { %3321 = vmatpush3.msra.mxu1 %v575_v23 }
 0x3ca   :  { %v3564_v24 = vpop.eup %3563 }
 0x3cb   :  { %v567_v25 = vsel %vm377_vm0, %v3564_v24, 0.0 }
 0x3cc   :  { %v3566_v26 = vpop.eup %3565  ;;  %568 = vadd.xlane.f32.xlu1 %v567_v25 }
 0x3cd   :  { %v564_v27 = vsel %vm377_vm0, %v3566_v26, 0.0 }
 0x3ce   :  { %565 = vadd.xlane.f32.xlu0 %v564_v27 }
 0x3dd   :  { %663 = vrot.lane.b32.xlu1 %v3985_v55, %s3862_s7 }
 0x3e1   :  { %742 = vrot.lane.b32.xlu1 %v3973_v41, %s3863_s9 }
 0x3e4   :  { %661 = vrot.lane.b32.xlu0 %v3987_v56, %s3862_s7 }
 0x3e5   :  { %825 = vrot.lane.b32.xlu1 %v3973_v41, %s3862_s7 }
 0x3e8   :  { %744 = vrot.lane.b32.xlu0 %v3975_v46, %s3863_s9 }
 0x3ec   :  { %827 = vrot.lane.b32.xlu0 %v3975_v46, %s3862_s7 }
 0x455   :  { %v569_v28 = vpop.xlane.xlu1 %568 }
 0x456   :  { %3567 = vrcp.f32 %v569_v28 }
 0x457   :  { %v566_v29 = vpop.xlane.xlu0 %565 }
 0x458   :  { %3569 = vrcp.f32 %v566_v29 }
 0x459   :  { %v4047_v30 = vpop.permute.xlu1 %663 }
 0x45a   :  { %3325 = vmatprep.subr.mxu1 %v4047_v30 }
 0x45b   :  { %v4052_v35 = vpop.permute.xlu0 %661 }
 0x45d   :  { %v743_v36 = vpop.permute.xlu1 %742 }
 0x45f   :  { %v745_v37 = vpop.permute.xlu0 %744 }
 0x461   :  { %v826_v38 = vpop.permute.xlu1 %825 }
 0x463   :  { %v3568_v31 = vpop.eup %3567  ;;  %v828_v39 = vpop.permute.xlu0 %827 }
 0x464   :  { %v573_v34 = vmul.f32 %v3568_v31, %v3564_v24 }
 0x465   :  { %v3570_v32 = vpop.eup %3569 }
 0x466   :  { %v572_v33 = vmul.f32 %v3570_v32, %v3566_v26 }
 0x468   :  { %3322 = vmatprep.mubr.msk.f32.mxu1 %vm377_vm0, %v572_v33 }
 0x469   :  { %3323 = vmatmul.mubr.msk.f32.vlgmr.msra.gmra.mxu1 %vm377_vm0, %v573_v34 }
 0x46a   :  { %3326 = vmatpush3.msra.mxu1 %v4047_v30  ;;  %3329 = vmatprep.mubr.msk.f32.mxu1 %vm377_vm0, %v572_v33 }
 0x46b   :  { %3327 = vmatprep.subr.mxu1 %v4052_v35 }
 0x46c   :  { %3328 = vmatpush3.msra.mxu1 %v4052_v35 }
 0x46d   :  { %3332 = vmatprep.subr.msk.mxu1 %vm377_vm0, %v3985_v55  ;;  %3330 = vmatmul.mubr.msk.f32.vlgmr.msra.gmra.mxu1 %vm377_vm0, %v573_v34 }
 0x46e   :  { %3333 = vmatpush3.xpose.msk.msra.mxu1 %vm377_vm0, %v3985_v55  ;;  %3336 = vmatprep.mubr.msk.f32.mxu1 %vm377_vm0, %v743_v36 }
 0x46f   :  { %3334 = vmatprep.subr.msk.mxu1 %vm377_vm0, %v3987_v56 }
 0x472   :  { %3335 = vmatpush3.xpose.msk.msra.mxu1 %vm377_vm0, %v3987_v56 }
 0x473   :  { %3339 = vmatprep.subr.msk.mxu1 %vm377_vm0, %v3998_v60 }
 0x475   :  { %3337 = vmatmul.mubr.msk.f32.vlgmr.msra.gmra.mxu1 %vm377_vm0, %v745_v37 }
 0x476   :  { %3340 = vmatpush3.xpose.msk.msra.mxu1 %vm377_vm0, %v3998_v60  ;;  %3343 = vmatprep.mubr.msk.f32.mxu1 %vm377_vm0, %v826_v38 }
 0x477   :  { %3341 = vmatprep.subr.msk.mxu1 %vm377_vm0, %v4002_v0 }
 0x47a   :  { %3342 = vmatpush3.xpose.msk.msra.mxu1 %vm377_vm0, %v4002_v0 }
 0x47b   :  { %3346 = vmatprep.subr.mxu1 %v577_v21 }
 0x47d   :  { %3344 = vmatmul.mubr.msk.f32.vlgmr.msra.gmra.mxu1 %vm377_vm0, %v828_v39 }
 0x47e   :  { %3347 = vmatpush3.msra.mxu1 %v577_v21 }
 0x47f   :  { %3348 = vmatprep.subr.mxu1 %v575_v23 }
 0x480   :  { %3349 = vmatpush3.msra.mxu1 %v575_v23 }
 0x481   :  { %3353 = vmatprep.subr.mxu1 %v4047_v30 }
 0x529   :  { %v4080_v40 = vpop.f32.mrf.mxu1 }
 0x52b   :  { %v4082_v42 = vpop.f32.mrf.mxu1 }
 0x52d   :  { %v4084_v43 = vpop.f32.mrf.mxu1 }
 0x52f   :  { %v4086_v44 = vpop.f32.mrf.mxu1 }
 0x530   :  { %v3460_v45 = vpack.i.bf16 %v4084_v43, %v4086_v44 }
 0x535   :  { %v3338_v47 = vpop.f32.mrf.mxu1 }
 0x537   :  { %v816_v48 = vpop.f32.mrf.mxu1 }
 0x53d   :  { %v3345_v49 = vpop.f32.mrf.mxu1 }
 0x53e   :  { %v905_v50 = vadd.f32 %v3345_v49, %v3338_v47 }
 0x53f   :  { %v899_v51 = vpop.f32.mrf.mxu1 }
 0x540   :  { %v909_v52 = vmul.f32 0.17677669, %v905_v50  ;;  %v900_v53 = vadd.f32 %v899_v51, %v816_v48 }
 0x542   :  { %v908_v54 = vmul.f32 0.17677669, %v900_v53  ;;  %v911_v57 = vadd.f32 %v909_v52, %v4018_v6 }
 0x544   :  { %v915_v58 = vsel %vm377_vm0, %v911_v57, -inf  ;;  %v910_v59 = vadd.f32 %v908_v54, %v4023_v9 }
 0x545   :  { %916 = vmax.xlane.f32.xlu0 %v915_v58 }
 0x546   :  { %v912_v61 = vsel %vm377_vm0, %v910_v59, -inf }
 0x547   :  { %913 = vmax.xlane.f32.xlu1 %v912_v61 }
 0x5ce   :  { %v917_v62 = vpop.xlane.xlu0 %916 }
 0x5cf   :  { %v919_v63 = vsub.f32 %v911_v57, %v917_v62 }
 0x5d0   :  { %v914_v1 = vpop.xlane.xlu1 %913 }
 0x5d1   :  { %v922_v2 = vmul.f32 1.442695, %v919_v63  ;;  %v918_v3 = vsub.f32 %v910_v59, %v914_v1 }
 0x5d3   :  { %3571 = vpow2.f32 %v922_v2  ;;  %v920_v4 = vmul.f32 1.442695, %v918_v3 }
 0x5d5   :  { %3573 = vpow2.f32 %v920_v4 }
 0x5e0   :  { %v3572_v5 = vpop.eup %3571 }
 0x5e1   :  { %v927_v7 = vsel %vm377_vm0, %v3572_v5, 0.0 }
 0x5e2   :  { %v3574_v8 = vpop.eup %3573  ;;  %928 = vadd.xlane.f32.xlu1 %v927_v7 }
 0x5e3   :  { %v924_v10 = vsel %vm377_vm0, %v3574_v8, 0.0 }
 0x5e4   :  { %925 = vadd.xlane.f32.xlu0 %v924_v10 }
 0x5f3   :  { %1187 = vrot.lane.b32.xlu1 %v3998_v60, %s3861_s6 }
 0x5f7   :  { %1094 = vrot.lane.b32.xlu1 %v3987_v56, %s3861_s6 }
 0x5fa   :  { %1096 = vrot.lane.b32.xlu0 %v3985_v55, %s3861_s6 }
 0x5fb   :  { %1090 = vrot.lane.b32.xlu1 %v3973_v41, %s3864_s26 }
 0x5fe   :  { %1185 = vrot.lane.b32.xlu0 %v4002_v0, %s3861_s6 }
 0x5ff   :  { %1092 = vrot.lane.b32.xlu1 %v3975_v46, %s3864_s26 }
 0x602   :  { %1181 = vrot.lane.b32.xlu0 %v3973_v41, %s3855_s25 }
 0x606   :  { %1183 = vrot.lane.b32.xlu0 %v3975_v46, %s3855_s25 }
 0x66b   :  { %v929_v11 = vpop.xlane.xlu1 %928 }
 0x66c   :  { %3575 = vrcp.f32 %v929_v11 }
 0x66d   :  { %v926_v12 = vpop.xlane.xlu0 %925 }
 0x66e   :  { %3577 = vrcp.f32 %v926_v12 }
 0x66f   :  { %v4112_v13 = vpop.permute.xlu1 %1187 }
 0x671   :  { %v4114_v14 = vpop.permute.xlu0 %1096 }
 0x672   :  { %3360 = vmatprep.subr.msk.mxu0 %vm377_vm0, %v4114_v14 }
 0x673   :  { %3361 = vmatpush3.xpose.msk.msra.mxu0 %vm377_vm0, %v4114_v14  ;;  %v4120_v15 = vpop.permute.xlu1 %1094 }
 0x674   :  { %3362 = vmatprep.subr.msk.mxu0 %vm377_vm0, %v4120_v15 }
 0x675   :  { %v4128_v22 = vpop.permute.xlu0 %1185 }
 0x677   :  { %3363 = vmatpush3.xpose.msk.msra.mxu0 %vm377_vm0, %v4120_v15  ;;  %v1091_v17 = vpop.permute.xlu1 %1090 }
 0x678   :  { %3364 = vmatprep.mubr.msk.f32.mxu0 %vm377_vm0, %v1091_v17 }
 0x679   :  { %v3576_v18 = vpop.eup %3575  ;;  %v1182_v24 = vpop.permute.xlu0 %1181 }
 0x67a   :  { %v933_v23 = vmul.f32 %v3576_v18, %v3572_v5 }
 0x67b   :  { %v3578_v19 = vpop.eup %3577  ;;  %v1093_v20 = vpop.permute.xlu1 %1092 }
 0x67c   :  { %3365 = vmatmul.mubr.msk.f32.vlgmr.msra.gmra.mxu0 %vm377_vm0, %v1093_v20  ;;  %v932_v21 = vmul.f32 %v3578_v19, %v3574_v8 }
 0x67d   :  { %v1184_v25 = vpop.permute.xlu0 %1183 }
 0x67e   :  { %3350 = vmatprep.mubr.msk.f32.mxu1 %vm377_vm0, %v932_v21 }
 0x67f   :  { %3351 = vmatmul.mubr.msk.f32.vlgmr.msra.gmra.mxu1 %vm377_vm0, %v933_v23 }
 0x680   :  { %3354 = vmatpush3.msra.mxu1 %v4047_v30  ;;  %3357 = vmatprep.mubr.msk.f32.mxu1 %vm377_vm0, %v932_v21 }
 0x681   :  { %3355 = vmatprep.subr.mxu1 %v4052_v35 }
 0x682   :  { %3356 = vmatpush3.msra.mxu1 %v4052_v35 }
 0x683   :  { %3367 = vmatprep.subr.msk.mxu1 %vm377_vm0, %v4112_v13  ;;  %3358 = vmatmul.mubr.msk.f32.vlgmr.msra.gmra.mxu1 %vm377_vm0, %v933_v23 }
 0x684   :  { %3368 = vmatpush3.xpose.msk.msra.mxu1 %vm377_vm0, %v4112_v13  ;;  %3371 = vmatprep.mubr.msk.f32.mxu1 %vm377_vm0, %v1182_v24 }
 0x685   :  { %3369 = vmatprep.subr.msk.mxu1 %vm377_vm0, %v4128_v22 }
 0x688   :  { %3370 = vmatpush3.xpose.msk.msra.mxu1 %vm377_vm0, %v4128_v22 }
 0x68b   :  { %3372 = vmatmul.mubr.msk.f32.vlgmr.msra.gmra.mxu1 %vm377_vm0, %v1184_v25 }
 0x73c   :  { %v3366_v32 = vpop.f32.mrf.mxu0 }
 0x73e   :  { %v1172_v35 = vpop.f32.mrf.mxu0 }
 0x73f   :  { %v4147_v26 = vpop.f32.mrf.mxu1 }
 0x741   :  { %v4149_v27 = vpop.f32.mrf.mxu1 }
 0x742   :  { %v3465_v28 = vpack.i.bf16 %v4147_v26, %v4149_v27 }
 0x743   :  { %v4153_v29 = vpop.f32.mrf.mxu1 }
 0x745   :  { %v4155_v30 = vpop.f32.mrf.mxu1 }
 0x746   :  { %v3470_v31 = vpack.i.bf16 %v4153_v29, %v4155_v30  ;;  %v3866_v29 = vmov 0.0   ;;  %v3520_v30 = vld [vmem:[#allocation7 + $0x30] sm:$0xff]  }
 0x74b   :  { %v3373_v33 = vpop.f32.mrf.mxu1 }
 0x74c   :  { %v1269_v34 = vadd.f32 %v3373_v33, %v3366_v32 }
 0x74d   :  { %v1263_v36 = vpop.f32.mrf.mxu1 }
 0x74e   :  { %v1273_v37 = vmul.f32 0.17677669, %v1269_v34  ;;  %v1264_v38 = vadd.f32 %v1263_v36, %v1172_v35 }
 0x750   :  { %v1272_v39 = vmul.f32 0.17677669, %v1264_v38  ;;  %v1275_v47 = vadd.f32 %v1273_v37, %v4018_v6 }
 0x752   :  { %v1279_v48 = vsel %vm377_vm0, %v1275_v47, -inf  ;;  %v1274_v49 = vadd.f32 %v1272_v39, %v4023_v9 }
 0x753   :  { %1280 = vmax.xlane.f32.xlu0 %v1279_v48 }
 0x754   :  { %v1276_v50 = vsel %vm377_vm0, %v1274_v49, -inf }
 0x755   :  { %1277 = vmax.xlane.f32.xlu1 %v1276_v50  ;;  %v3523_v50 = vld [vmem:[#allocation7 + $0x18] sm:$0xff]  }
 0x7dc   :  { %v1281_v51 = vpop.xlane.xlu0 %1280 }
 0x7dd   :  { %v1283_v52 = vsub.f32 %v1275_v47, %v1281_v51  ;;  %v3524_v51 = vld [vmem:[#allocation7 + $0x10] sm:$0xff]  }
 0x7de   :  { %v1278_v53 = vpop.xlane.xlu1 %1277 }
 0x7df   :  { %v1286_v54 = vmul.f32 1.442695, %v1283_v52  ;;  %v1282_v57 = vsub.f32 %v1274_v49, %v1278_v53  ;;  %v3522_v49 = vld [vmem:[#allocation7 + $0x20] sm:$0xff]   ;;  %v3525_v52 = vld [vmem:[#allocation7 + $0x8] sm:$0xff]  }
 0x7e1   :  { %3579 = vpow2.f32 %v1286_v54  ;;  %v1284_v58 = vmul.f32 1.442695, %v1282_v57  ;;  %v3526_v57 = vld [vmem:[#allocation7] sm:$0xff]  }
 0x7e3   :  { %3581 = vpow2.f32 %v1284_v58 }
 0x7ee   :  { %v3580_v59 = vpop.eup %3579 }
 0x7ef   :  { %v1291_v61 = vsel %vm377_vm0, %v3580_v59, 0.0 }
 0x7f0   :  { %v3582_v62 = vpop.eup %3581  ;;  %1292 = vadd.xlane.f32.xlu1 %v1291_v61 }
 0x7f1   :  { %v1288_v63 = vsel %vm377_vm0, %v3582_v62, 0.0 }
 0x7f2   :  { %1289 = vadd.xlane.f32.xlu0 %v1288_v63 }
 0x801   :  { %1385 = vrot.lane.b32.xlu1 %v3987_v56, %s3863_s9 }
 0x805   :  { %1466 = vrot.lane.b32.xlu1 %v3973_v41, %s3865_s27 }
 0x808   :  { %1387 = vrot.lane.b32.xlu0 %v3985_v55, %s3863_s9 }
 0x809   :  { %1549 = vrot.lane.b32.xlu1 %v3973_v41, %s3850_s24 }
 0x80c   :  { %1468 = vrot.lane.b32.xlu0 %v3975_v46, %s3865_s27 }
 0x810   :  { %1551 = vrot.lane.b32.xlu0 %v3975_v46, %s3850_s24 }
 0x879   :  { %v1293_v1 = vpop.xlane.xlu1 %1292 }
 0x87a   :  { %3583 = vrcp.f32 %v1293_v1 }
 0x87b   :  { %v1290_v2 = vpop.xlane.xlu0 %1289 }
 0x87c   :  { %3585 = vrcp.f32 %v1290_v2 }
 0x87d   :  { %v1386_v3 = vpop.permute.xlu1 %1385 }
 0x87f   :  { %v1388_v56 = vpop.permute.xlu0 %1387 }
 0x880   :  { %3381 = vmatprep.subr.mxu1 %v1388_v56 }
 0x881   :  { %3382 = vmatpush3.msra.mxu1 %v1388_v56  ;;  %v1467_v46 = vpop.permute.xlu1 %1466 }
 0x882   :  { %3383 = vmatprep.subr.mxu1 %v1386_v3 }
 0x883   :  { %3384 = vmatpush3.msra.mxu1 %v1386_v3  ;;  %v1469_v7 = vpop.permute.xlu0 %1468 }
 0x884   :  { %3388 = vmatprep.subr.msk.mxu1 %vm377_vm0, %v4114_v14 }
 0x885   :  { %v1550_v8 = vpop.permute.xlu1 %1549 }
 0x887   :  { %v3584_v41 = vpop.eup %3583  ;;  %v1552_v10 = vpop.permute.xlu0 %1551 }
 0x888   :  { %v4179_v5 = vmul.f32 %v3584_v41, %v3580_v59 }
 0x889   :  { %v3586_v55 = vpop.eup %3585 }
 0x88a   :  { %v1296_v4 = vmul.f32 %v3586_v55, %v3582_v62 }
 0x88c   :  { %3378 = vmatprep.mubr.msk.f32.mxu0 %vm377_vm0, %v1296_v4  ;;  %3385 = vmatprep.mubr.msk.f32.mxu1 %vm377_vm0, %v1296_v4 }
 0x88d   :  { %3386 = vmatmul.mubr.msk.f32.vlgmr.msra.gmra.mxu1 %vm377_vm0, %v4179_v5 }
 0x88e   :  { %3389 = vmatpush3.xpose.msk.msra.mxu1 %vm377_vm0, %v4114_v14  ;;  %3392 = vmatprep.mubr.msk.f32.mxu1 %vm377_vm0, %v1467_v46 }
 0x88f   :  { %3390 = vmatprep.subr.msk.mxu1 %vm377_vm0, %v4120_v15 }
 0x892   :  { %3391 = vmatpush3.xpose.msk.msra.mxu1 %vm377_vm0, %v4120_v15 }
 0x893   :  { %3395 = vmatprep.subr.msk.mxu1 %vm377_vm0, %v4112_v13 }
 0x895   :  { %3393 = vmatmul.mubr.msk.f32.vlgmr.msra.gmra.mxu1 %vm377_vm0, %v1469_v7 }
 0x896   :  { %3396 = vmatpush3.xpose.msk.msra.mxu1 %vm377_vm0, %v4112_v13  ;;  %3399 = vmatprep.mubr.msk.f32.mxu1 %vm377_vm0, %v1550_v8 }
 0x897   :  { %3397 = vmatprep.subr.msk.mxu1 %vm377_vm0, %v4128_v22 }
 0x89a   :  { %3398 = vmatpush3.xpose.msk.msra.mxu1 %vm377_vm0, %v4128_v22 }
 0x89b   :  { %3409 = vmatprep.subr.mxu1 %v1388_v56 }
 0x89d   :  { %3400 = vmatmul.mubr.msk.f32.vlgmr.msra.gmra.mxu1 %vm377_vm0, %v1552_v10 }
 0x89e   :  { %3410 = vmatpush3.msra.mxu1 %v1388_v56 }
 0x89f   :  { %3411 = vmatprep.subr.mxu1 %v1386_v3 }
 0x8a0   :  { %3412 = vmatpush3.msra.mxu1 %v1386_v3 }
 0x94d   :  { %v3387_v11 = vpop.f32.mrf.mxu1 }
 0x94f   :  { %v1457_v12 = vpop.f32.mrf.mxu1 }
 0x950   :  { %v3480_v14 = vpack.i.bf16 %v3387_v11, %v1457_v12 }
 0x955   :  { %v3394_v15 = vpop.f32.mrf.mxu1 }
 0x957   :  { %v1540_v13 = vpop.f32.mrf.mxu1 }
 0x95d   :  { %v3401_v17 = vpop.f32.mrf.mxu1 }
 0x95e   :  { %v1629_v18 = vadd.f32 %v3401_v17, %v3394_v15 }
 0x95f   :  { %v1623_v19 = vpop.f32.mrf.mxu1 }
 0x960   :  { %v1633_v20 = vmul.f32 0.17677669, %v1629_v18  ;;  %v1624_v21 = vadd.f32 %v1623_v19, %v1540_v13 }
 0x962   :  { %v1632_v23 = vmul.f32 0.17677669, %v1624_v21  ;;  %v1635_v22 = vadd.f32 %v1633_v20, %v4018_v6 }
 0x964   :  { %v1639_v24 = vsel %vm377_vm0, %v1635_v22, -inf  ;;  %v1634_v25 = vadd.f32 %v1632_v23, %v4023_v9 }
 0x965   :  { %1640 = vmax.xlane.f32.xlu0 %v1639_v24 }
 0x966   :  { %v1636_v32 = vsel %vm377_vm0, %v1634_v25, -inf }
 0x967   :  { %1637 = vmax.xlane.f32.xlu1 %v1636_v32 }
 0x9ee   :  { %v1641_v33 = vpop.xlane.xlu0 %1640 }
 0x9ef   :  { %v1643_v34 = vsub.f32 %v1635_v22, %v1641_v33 }
 0x9f0   :  { %v1638_v35 = vpop.xlane.xlu1 %1637 }
 0x9f1   :  { %v1646_v36 = vmul.f32 1.442695, %v1643_v34  ;;  %v1642_v37 = vsub.f32 %v1634_v25, %v1638_v35 }
 0x9f3   :  { %3587 = vpow2.f32 %v1646_v36  ;;  %v1644_v38 = vmul.f32 1.442695, %v1642_v37 }
 0x9f5   :  { %3589 = vpow2.f32 %v1644_v38 }
 0xa00   :  { %v3588_v39 = vpop.eup %3587 }
 0xa01   :  { %v1651_v47 = vsel %vm377_vm0, %v3588_v39, 0.0 }
 0xa02   :  { %v3590_v6 = vpop.eup %3589  ;;  %1652 = vadd.xlane.f32.xlu1 %v1651_v47 }
 0xa03   :  { %v1648_v48 = vsel %vm377_vm0, %v3590_v6, 0.0 }
 0xa04   :  { %1649 = vadd.xlane.f32.xlu0 %v1648_v48  ;;  %v2078_v48 = vld [vmem:[#allocation8 + $0x1c0] sm:$0xff] }
 0xa13   :  { %1298 = vrot.lane.b32.xlu1 %v4002_v0, %s3863_s9 }
 0xa17   :  { %3461 = vrot.lane.b32.xlu1 %v3460_v45, %s3865_s27 }
 0xa1a   :  { %1300 = vrot.lane.b32.xlu0 %v3998_v60, %s3863_s9 }
 0xa1b   :  { %3471 = vrot.lane.b32.xlu1 %v3470_v31, %s3864_s26  ;;  %v3521_v31 = vld [vmem:[#allocation7 + $0x28] sm:$0xff]  }
 0xa1e   :  { %3466 = vrot.lane.b32.xlu0 %v3465_v28, %s3850_s24  ;;  %v3519_v28 = vld [vmem:[#allocation7 + $0x38] sm:$0xff]   ;;  %s3868_s24 = smov [#allocation17]  }
 0xa1f   :  { %3481 = vrot.lane.b32.xlu1 %v3480_v14, %s3863_s9 }
 0xa8b   :  { %v1653_v0 = vpop.xlane.xlu1 %1652 }
 0xa8c   :  { %3591 = vrcp.f32 %v1653_v0  ;;  %v2082_v0 = vld [vmem:[#allocation8 + $0x1e0] sm:$0xff] }
 0xa8d   :  { %v1650_v9 = vpop.xlane.xlu0 %1649 }
 0xa8e   :  { %3593 = vrcp.f32 %v1650_v9  ;;  %v2079_v9 = vld [vmem:[#allocation8 + $0x1c8] sm:$0xff] }
 0xa8f   :  { %v1299_v44 = vpop.permute.xlu1 %1298 }
 0xa91   :  { %v1301_v43 = vpop.permute.xlu0 %1300 }
 0xa92   :  { %3374 = vmatprep.subr.mxu0 %v1301_v43 }
 0xa93   :  { %3375 = vmatpush3.msra.mxu0 %v1301_v43  ;;  %v3462_v56 = vpop.permute.xlu1 %3461 }
 0xa94   :  { %3376 = vmatprep.subr.mxu0 %v1299_v44  ;;  %v3464_v3 = vunpack.i.h.bf16 %v3462_v56  ;;  %v3463_v41 = vunpack.i.l.bf16 %v3462_v56  ;;  %v2066_v56 = vld [vmem:[#allocation8 + $0x160] sm:$0xff] }
 0xa95   :  { %3377 = vmatpush3.msra.mxu0 %v1299_v44  ;;  %v3467_v55 = vpop.permute.xlu0 %3466 }
 0xa96   :  { %3379 = vmatmul.mubr.msk.f32.vlgmr.msra.gmra.mxu0 %vm377_vm0, %v4179_v5  ;;  %3402 = vmatprep.subr.mxu0 %v1301_v43  ;;  %v3469_v5 = vunpack.i.h.bf16 %v3467_v55  ;;  %v3468_v46 = vunpack.i.l.bf16 %v3467_v55  ;;  %v1871_v7 = vsel %vm377_vm0, %v4080_v40, %v3464_v3  ;;  %v1870_v8 = vsel %vm377_vm0, %v4082_v42, %v3463_v41  ;;  %v2063_v3 = vld [vmem:[#allocation8 + $0x148] sm:$0xff] }
 0xa97   :  { %3403 = vmatpush3.msra.mxu0 %v1301_v43  ;;  %v3472_v4 = vpop.permute.xlu1 %3471  ;;  %v3139_v43 = vcombine.low %v2078_v48, %v2082_v0  ;;  %v2067_v55 = vld [vmem:[#allocation8 + $0x168] sm:$0xff] }
 0xa98   :  { %3404 = vmatprep.subr.mxu0 %v1299_v44  ;;  %v3474_v11 = vunpack.i.h.bf16 %v3472_v4  ;;  %v3473_v12 = vunpack.i.l.bf16 %v3472_v4  ;;  %v1873_v14 = vsel %vm1872_vm2, %v1870_v8, %v3468_v46  ;;  %v1874_v15 = vsel %vm1872_vm2, %v1871_v7, %v3469_v5  ;;  %v2054_v7 = vld [vmem:[#allocation8 + $0x100] sm:$0xff] }
 0xa99   :  { %3405 = vmatpush3.msra.mxu0 %v1299_v44  ;;  %v3592_v60 = vpop.eup %3591  ;;  %v3140_v44 = vcombine.high %v2078_v48, %v2082_v0  ;;  %v3125_v5 = vcombine.low %v2063_v3, %v2067_v55  ;;  %v3126_v46 = vcombine.high %v2063_v3, %v2067_v55  ;;  %v2058_v8 = vld [vmem:[#allocation8 + $0x120] sm:$0xff]  ;;  %v2080_v0 = vld [vmem:[#allocation8 + $0x1d0] sm:$0xff] }
 0xa9a   :  { %v1657_v27 = vmul.f32 %v3592_v60, %v3588_v39  ;;  %3416 = vmatprep.subr.bf16.mxu0 %v3866_v29  ;;  %v1876_v19 = vsel %vm1875_vm3, %v1873_v14, %v3473_v12  ;;  %v1877_v20 = vsel %vm1875_vm3, %v1874_v15, %v3474_v11  ;;  %v2083_v60 = vld [vmem:[#allocation8 + $0x1e8] sm:$0xff]  ;;  %v3116_v11 = vcombine.high %v2054_v7, %v2058_v8  ;;  %v2022_v48 = vld [vmem:[#allocation8] sm:$0xff] }
 0xa9b   :  { %v3594_v45 = vpop.eup %3593  ;;  %v3482_v18 = vpop.permute.xlu1 %3481  ;;  %2406 = vmatprep.subr.bf16.mxu1 %v3140_v44  ;;  %v2059_v12 = vld [vmem:[#allocation8 + $0x128] sm:$0xff]  ;;  %v3115_v14 = vcombine.low %v2054_v7, %v2058_v8  ;;  %v2026_v44 = vld [vmem:[#allocation8 + $0x20] sm:$0xff]  ;;  %v2073_v7 = vld [vmem:[#allocation8 + $0x198] sm:$0xff] }
 0xa9c   :  { %v1656_v26 = vmul.f32 %v3594_v45, %v3590_v6  ;;  %v3484_v40 = vunpack.i.h.bf16 %v3482_v18  ;;  %v3483_v22 = vunpack.i.l.bf16 %v3482_v18  ;;  %v2070_v45 = vld [vmem:[#allocation8 + $0x180] sm:$0xff]  ;;  %v2077_v8 = vld [vmem:[#allocation8 + $0x1b8] sm:$0xff] }
 0xa9d   :  { %v2050_v18 = vld [vmem:[#allocation8 + $0xe0] sm:$0xff] }
 0xa9e   :  { %3406 = vmatprep.mubr.msk.f32.mxu0 %vm377_vm0, %v1656_v26  ;;  %3413 = vmatprep.mubr.msk.f32.mxu1 %vm377_vm0, %v1656_v26  ;;  %v2074_v26 = vld [vmem:[#allocation8 + $0x1a0] sm:$0xff] }
 0xa9f   :  { %3407 = vmatmul.mubr.msk.f32.vlgmr.msra.gmra.mxu0 %vm377_vm0, %v1657_v27  ;;  %3414 = vmatmul.mubr.msk.f32.vlgmr.msra.gmra.mxu1 %vm377_vm0, %v1657_v27  ;;  %v3141_v27 = vcombine.low %v2079_v9, %v2083_v60  ;;  %v3082_v55 = vld [vmem:[#allocation13] ss:$0 sm:$0xff] }
 0xaa0   :  { %2438 = vmatprep.mubr.bf16.mxu1 %v3860_v16  ;;  %3417 = vmatpush3.bf16.msra.mxu0 %v3519_v28  ;;  %v3142_v28 = vcombine.high %v2079_v9, %v2083_v60  ;;  %v2084_v9 = vld [vmem:[#allocation8 + $0x1f0] sm:$0xff] }
 0xaa1   :  { %3418 = vmatprep.subr.bf16.mxu0 %v3866_v29  ;;  %3432 = vmatprep.mubr.msk.bf16.mxu0 %vm3867_vm1, %v3866_v29  ;;  %v3143_v60 = vcombine.low %v2080_v0, %v2084_v9 }
 0xaa2   :  { %2407 = vmatpush1.bf16.msra.mxu1 %v3139_v43 }
 0xaa4   :  { %3419 = vmatpush3.bf16.msra.mxu0 %v3520_v30  ;;  %v2071_v30 = vld [vmem:[#allocation8 + $0x188] sm:$0xff] }
 0xaa5   :  { %3420 = vmatprep.subr.bf16.mxu0 %v3866_v29 }
 0xaa8   :  { %3421 = vmatpush3.bf16.msra.mxu0 %v3521_v31  ;;  %v2075_v31 = vld [vmem:[#allocation8 + $0x1a8] sm:$0xff] }
 0xaa9   :  { %3422 = vmatprep.subr.bf16.mxu0 %v3866_v29 }
 0xaac   :  { %3423 = vmatpush3.bf16.msra.mxu0 %v3522_v49  ;;  %v3134_v49 = vcombine.high %v2071_v30, %v2075_v31 }
 0xaad   :  { %3424 = vmatprep.subr.bf16.mxu0 %v3866_v29 }
 0xab0   :  { %3425 = vmatpush3.bf16.msra.mxu0 %v3523_v50  ;;  %v3131_v50 = vcombine.low %v2070_v45, %v2074_v26 }
 0xab1   :  { %3426 = vmatprep.subr.bf16.mxu0 %v3866_v29 }
 0xab4   :  { %3427 = vmatpush3.bf16.msra.mxu0 %v3524_v51  ;;  %v3133_v51 = vcombine.low %v2071_v30, %v2075_v31 }
 0xab5   :  { %3428 = vmatprep.subr.bf16.mxu0 %v3866_v29 }
 0xab8   :  { %3429 = vmatpush3.bf16.msra.mxu0 %v3525_v52 }
 0xab9   :  { %3430 = vmatprep.subr.bf16.mxu0 %v3866_v29  ;;  %v3132_v29 = vcombine.high %v2070_v45, %v2074_v26  ;;  %v2081_v45 = vld [vmem:[#allocation8 + $0x1d8] sm:$0xff] }
 0xaba   :  { %v2085_v26 = vld [vmem:[#allocation8 + $0x1f8] sm:$0xff] }
 0xabb   :  { %2408 = vmatprep.subr.bf16.mxu1 %v3132_v29  ;;  %v3145_v29 = vcombine.low %v2081_v45, %v2085_v26 }
 0xabc   :  { %3431 = vmatpush3.bf16.msra.mxu0 %v3526_v57  ;;  %2409 = vmatpush1.bf16.msra.mxu1 %v3131_v50 }
 0xabd   :  { %2449 = vmatprep.subr.bf16.mxu0 %v3142_v28  ;;  %v2027_v28 = vld [vmem:[#allocation8 + $0x28] sm:$0xff] }
 0xb56   :  { %v3380_v53 = vpop.f32.mrf.mxu0 }
 0xb58   :  { %v1376_v54 = vpop.f32.mrf.mxu0 }
 0xb59   :  { %v3475_v58 = vpack.i.bf16 %v3380_v53, %v1376_v54  ;;  %v3631_v53 = vld [vmem:[#allocation2] sm:$0xff] }
 0xb5b   :  { %3476 = vrot.lane.b32.xlu0 %v3475_v58, %s3855_s25  ;;  %s2993_s25 = sshll.u32 %s3868_s24, 4  ;;  %s2994_s25 = int_to_ptr.vmem [resolvable:$true] %s2993_s25 }
 0xb5c   :  { %s3813_s28 = scalar_lea.vmem %s2994_s25, 256  ;;  %p3818_p4 = scmp.lt.s32.totalorder %s2994_s25, %s2994_s25 }
 0xb5d   :  { %p3814_p3 = scmp.ne.s32.totalorder %s2994_s25, %s3813_s28  ;;  %p3819_p5 = scmp.lt.s32.totalorder %s3813_s28, %s3813_s28 }
 0xb5f   :  { %v3408_v59 = vpop.f32.mrf.mxu0  ;;  %v3415_v61 = vpop.f32.mrf.mxu1  ;;  %p3820_p6 = por %p3819_p5, %p3818_p4 }
 0xb61   :  { %v1730_v62 = vpop.f32.mrf.mxu0  ;;  %v1805_v63 = vpop.f32.mrf.mxu1  ;;  %p3821_p7 = pnand %p3820_p6, %p3814_p3 }
 0xb62   :  { %v3485_v1 = vpack.i.bf16 %v3408_v59, %v1730_v62  ;;  %v3490_v2 = vpack.i.bf16 %v3415_v61, %v1805_v63  ;;  %v3632_v61 = vld [vmem:[#allocation2 + $0x8] sm:$0xff] }
 0xb64   :  { %3491 = vrot.lane.b32.xlu1 %v3490_v2, %s3861_s6  ;;  %3486 = vrot.lane.b32.xlu0 %v3485_v1, %s3862_s7  ;;  %v2062_v2 = vld [vmem:[#allocation8 + $0x140] sm:$0xff] }
 0xb65   :  { %v3124_v41 = vcombine.high %v2062_v2, %v2066_v56  ;;  %v3123_v4 = vcombine.low %v2062_v2, %v2066_v56 }
 0xb67   :  { %2410 = vmatprep.subr.bf16.mxu1 %v3124_v41 }
 0xb68   :  { %2411 = vmatpush1.bf16.msra.mxu1 %v3123_v4 }
 0xb69   :  { %2412 = vmatprep.subr.bf16.mxu1 %v3116_v11 }
 0xb6c   :  { %2413 = vmatpush1.bf16.msra.mxu1 %v3115_v14 }
 0xbcd   :  { %v3477_v10 = vpop.permute.xlu0 %3476 }
 0xbce   :  { %v3479_v13 = vunpack.i.h.bf16 %v3477_v10  ;;  %v3478_v17 = vunpack.i.l.bf16 %v3477_v10  ;;  %v2055_v10 = vld [vmem:[#allocation8 + $0x108] sm:$0xff] }
 0xbcf   :  { %v3117_v15 = vcombine.low %v2055_v10, %v2059_v12 }
 0xbd0   :  { %v1879_v21 = vsel %vm1878_vm4, %v1876_v19, %v3478_v17  ;;  %v1880_v23 = vsel %vm1878_vm4, %v1877_v20, %v3479_v13  ;;  %v3118_v13 = vcombine.high %v2055_v10, %v2059_v12  ;;  %v2046_v17 = vld [vmem:[#allocation8 + $0xc0] sm:$0xff]  ;;  %v2047_v19 = vld [vmem:[#allocation8 + $0xc8] sm:$0xff] }
 0xbd1   :  { %v1882_v35 = vsel %vm1881_vm5, %v1879_v21, %v3483_v22  ;;  %v1883_v36 = vsel %vm1881_vm5, %v1880_v23, %v3484_v40  ;;  %v3107_v20 = vcombine.low %v2046_v17, %v2050_v18  ;;  %v3108_v21 = vcombine.high %v2046_v17, %v2050_v18  ;;  %v2051_v23 = vld [vmem:[#allocation8 + $0xe8] sm:$0xff]  ;;  %v2038_v40 = vld [vmem:[#allocation8 + $0x80] sm:$0xff]  ;;  %v2068_v17 = vld [vmem:[#allocation8 + $0x170] sm:$0xff] }
 0xbd2   :  { %v2042_v22 = vld [vmem:[#allocation8 + $0xa0] sm:$0xff]  ;;  %v2065_v18 = vld [vmem:[#allocation8 + $0x158] sm:$0xff] }
 0xbd3   :  { %2414 = vmatprep.subr.bf16.mxu1 %v3108_v21  ;;  %v3137_v21 = vcombine.low %v2073_v7, %v2077_v8 }
 0xbd4   :  { %2415 = vmatpush1.bf16.msra.mxu1 %v3107_v20 }
 0xbd6   :  { %v3487_v42 = vpop.permute.xlu0 %3486  ;;  %v3492_v24 = vpop.permute.xlu1 %3491 }
 0xbd7   :  { %v3489_v25 = vunpack.i.h.bf16 %v3487_v42  ;;  %v3488_v32 = vunpack.i.l.bf16 %v3487_v42  ;;  %v3494_v33 = vunpack.i.h.bf16 %v3492_v24  ;;  %v3493_v34 = vunpack.i.l.bf16 %v3492_v24 }
 0xbd8   :  { %v3109_v42 = vcombine.low %v2047_v19, %v2051_v23  ;;  %v3110_v24 = vcombine.high %v2047_v19, %v2051_v23  ;;  %v2069_v19 = vld [vmem:[#allocation8 + $0x178] sm:$0xff] }
 0xbd9   :  { %v1885_v37 = vsel %vm1884_vm6, %v1882_v35, %v3488_v32  ;;  %v1886_v38 = vsel %vm1884_vm6, %v1883_v36, %v3489_v25  ;;  %v3100_v25 = vcombine.high %v2038_v40, %v2042_v22  ;;  %v2039_v32 = vld [vmem:[#allocation8 + $0x88] sm:$0xff]  ;;  %v2034_v36 = vld [vmem:[#allocation8 + $0x60] sm:$0xff] }
 0xbda   :  { %v1888_v39 = vsel %vm1887_vm7, %v1885_v37, %v3493_v34  ;;  %v1889_v47 = vsel %vm1887_vm7, %v1886_v38, %v3494_v33  ;;  %v2043_v33 = vld [vmem:[#allocation8 + $0xa8] sm:$0xff]  ;;  %v2030_v34 = vld [vmem:[#allocation8 + $0x40] sm:$0xff] }
 0xbdb   :  { %v1890_v6 = vpack.c.bf16 %v1889_v47, %v1888_v39  ;;  %v3102_v35 = vcombine.high %v2039_v32, %v2043_v33  ;;  %v2031_v37 = vld [vmem:[#allocation8 + $0x48] sm:$0xff]  ;;  %v3099_v39 = vcombine.low %v2038_v40, %v2042_v22  ;;  %2416 = vmatprep.subr.bf16.mxu1 %v3100_v25  ;;  %v3101_v47 = vcombine.low %v2039_v32, %v2043_v33  ;;  %v2056_v22 = vld [vmem:[#allocation8 + $0x110] sm:$0xff]  ;;  %v2061_v25 = vld [vmem:[#allocation8 + $0x138] sm:$0xff] }
 0xbdc   :  { %v2035_v38 = vld [vmem:[#allocation8 + $0x68] sm:$0xff]  ;;  %v3091_v30 = vcombine.low %v2030_v34, %v2034_v36  ;;  %v3130_v40 = vcombine.high %v2065_v18, %v2069_v19  ;;  %v3129_v33 = vcombine.low %v2065_v18, %v2069_v19  ;;  %v3541_v18 = vld [vmem:[#allocation10 + $0x20] sm:$0xff]  }
 0xbdd   :  { %3433 = vmatmul.mubr.bf16.vlgmr.msra.gmra.mxu0 %v1890_v6  ;;  %v3092_v6 = vcombine.high %v2030_v34, %v2034_v36  ;;  %v3094_v43 = vcombine.high %v2031_v37, %v2035_v38  ;;  %2417 = vmatpush1.bf16.msra.mxu1 %v3099_v39  ;;  %v3093_v31 = vcombine.low %v2031_v37, %v2035_v38  ;;  %v2048_v36 = vld [vmem:[#allocation8 + $0xd0] sm:$0xff]  ;;  %v2049_v38 = vld [vmem:[#allocation8 + $0xd8] sm:$0xff]  ;;  %v3542_v19 = vld [vmem:[#allocation10 + $0xa0] sm:$0xff]  }
 0xbde   :  { %2481 = vmatprep.mubr.bf16.mxu0 %v3860_v16  ;;  %2450 = vmatpush1.bf16.msra.mxu0 %v3141_v27  ;;  %v2023_v27 = vld [vmem:[#allocation8 + $0x8] sm:$0xff]  ;;  %v2052_v37 = vld [vmem:[#allocation8 + $0xf0] sm:$0xff]  ;;  %v2053_v39 = vld [vmem:[#allocation8 + $0xf8] sm:$0xff] }
 0xbdf   :  { %2451 = vmatprep.subr.bf16.mxu0 %v3134_v49  ;;  %2418 = vmatprep.subr.bf16.mxu1 %v3092_v6  ;;  %v3084_v49 = vcombine.high %v2022_v48, %v2026_v44  ;;  %v3086_v50 = vcombine.high %v2023_v27, %v2027_v28 }
 0xbe1   :  { %2419 = vmatpush1.bf16.msra.mxu1 %v3091_v30  ;;  %v2033_v30 = vld [vmem:[#allocation8 + $0x58] sm:$0xff] }
 0xbe2   :  { %2452 = vmatpush1.bf16.msra.mxu0 %v3133_v51  ;;  %v3083_v51 = vcombine.low %v2022_v48, %v2026_v44  ;;  %2420 = vmatprep.subr.bf16.mxu1 %v3084_v49  ;;  %v3112_v48 = vcombine.high %v2048_v36, %v2052_v37  ;;  %v2045_v44 = vld [vmem:[#allocation8 + $0xb8] sm:$0xff] }
 0xbe3   :  { %2453 = vmatprep.subr.bf16.mxu0 %v3126_v46  ;;  %v2076_v46 = vld [vmem:[#allocation8 + $0x1b0] sm:$0xff] }
 0xbe5   :  { %2421 = vmatpush1.bf16.msra.mxu1 %v3083_v51 }
 0xbe6   :  { %2454 = vmatpush1.bf16.msra.mxu0 %v3125_v5  ;;  %v2072_v5 = vld [vmem:[#allocation8 + $0x190] sm:$0xff] }
 0xbe7   :  { %2455 = vmatprep.subr.bf16.mxu0 %v3118_v13  ;;  %v3136_v14 = vcombine.high %v2072_v5, %v2076_v46  ;;  %v2064_v13 = vld [vmem:[#allocation8 + $0x150] sm:$0xff]  ;;  %v3135_v20 = vcombine.low %v2072_v5, %v2076_v46  ;;  %v3530_v5 = vld [vmem:[#allocation10 + $0xb8] sm:$0xff]  }
 0xbe8   :  { %v3128_v23 = vcombine.high %v2064_v13, %v2068_v17  ;;  %v3127_v32 = vcombine.low %v2064_v13, %v2068_v17  ;;  %v3531_v46 = vld [vmem:[#allocation10 + $0x70] sm:$0xff]   ;;  %v3539_v13 = vld [vmem:[#allocation10 + $0x60] sm:$0xff]  }
 0xbe9   :  { %v3540_v17 = vld [vmem:[#allocation10 + $0xe0] sm:$0xff]  }
 0xbea   :  { %2456 = vmatpush1.bf16.msra.mxu0 %v3117_v15  ;;  %v3138_v15 = vcombine.high %v2073_v7, %v2077_v8  ;;  %v3532_v7 = vld [vmem:[#allocation10 + $0xf0] sm:$0xff]  }
 0xbeb   :  { %2457 = vmatprep.subr.bf16.mxu0 %v3110_v24  ;;  %v2057_v24 = vld [vmem:[#allocation8 + $0x118] sm:$0xff]  ;;  %v3533_v8 = vld [vmem:[#allocation10 + $0x30] sm:$0xff]  }
 0xbec   :  { %v3121_v6 = vcombine.low %v2057_v24, %v2061_v25 }
 0xbee   :  { %2458 = vmatpush1.bf16.msra.mxu0 %v3109_v42  ;;  %v2060_v42 = vld [vmem:[#allocation8 + $0x130] sm:$0xff] }
 0xbef   :  { %2459 = vmatprep.subr.bf16.mxu0 %v3102_v35  ;;  %v3120_v34 = vcombine.high %v2056_v22, %v2060_v42  ;;  %v3122_v35 = vcombine.high %v2057_v24, %v2061_v25  ;;  %v3549_v24 = vld [vmem:[#allocation10 + $0x10] sm:$0xff]  }
 0xbf0   :  { %v3550_v25 = vld [vmem:[#allocation10 + $0x90] sm:$0xff]  }
 0xbf2   :  { %2460 = vmatpush1.bf16.msra.mxu0 %v3101_v47  ;;  %v3119_v47 = vcombine.low %v2056_v22, %v2060_v42  ;;  %v3547_v22 = vld [vmem:[#allocation10 + $0x50] sm:$0xff]  }
 0xbf3   :  { %2461 = vmatprep.subr.bf16.mxu0 %v3094_v43  ;;  %v2041_v43 = vld [vmem:[#allocation8 + $0x98] sm:$0xff]  ;;  %v3548_v42 = vld [vmem:[#allocation10 + $0xd0] sm:$0xff]  }
 0xbf6   :  { %2462 = vmatpush1.bf16.msra.mxu0 %v3093_v31  ;;  %v2037_v31 = vld [vmem:[#allocation8 + $0x78] sm:$0xff] }
 0xbf7   :  { %2463 = vmatprep.subr.bf16.mxu0 %v3086_v50  ;;  %v3105_v50 = vcombine.low %v2041_v43, %v2045_v44 }
 0xc9d   :  { %v1989_v52 = vpop.f32.mrf.mxu0 }
 0xc9e   :  { %v4241_v54 = vadd.f32 %v3631_v53, %v1989_v52  ;;  %v3085_v52 = vcombine.low %v2023_v27, %v2027_v28  ;;  %v3144_v53 = vcombine.high %v2080_v0, %v2084_v9  ;;  %v2040_v0 = vld [vmem:[#allocation8 + $0x90] sm:$0xff]  ;;  %v3106_v27 = vcombine.high %v2041_v43, %v2045_v44 }
 0xc9f   :  { %v3434_v57 = vpop.f32.mrf.mxu0  ;;  %v2044_v9 = vld [vmem:[#allocation8 + $0xb0] sm:$0xff] }
 0xca0   :  { %v1999_v58 = vmul.f32 %v4241_v54, %v4241_v54  ;;  %v3146_v57 = vcombine.high %v2081_v45, %v2085_v26  ;;  %2464 = vmatpush1.bf16.msra.mxu0 %v3085_v52  ;;  %2492 = vmatprep.subr.bf16.mxu1 %v3144_v53  ;;  %v3113_v45 = vcombine.low %v2049_v38, %v2053_v39  ;;  %v2032_v28 = vld [vmem:[#allocation8 + $0x50] sm:$0xff] }
 0xca1   :  { %v1992_v59 = vpop.f32.mrf.mxu0  ;;  %v3104_v26 = vcombine.high %v2040_v0, %v2044_v9  ;;  %v3103_v49 = vcombine.low %v2040_v0, %v2044_v9  ;;  %v3098_v52 = vcombine.high %v2033_v30, %v2037_v31  ;;  %v2024_v53 = vld [vmem:[#allocation8 + $0x10] sm:$0xff] }
 0xca2   :  { %v4245_v62 = vadd.f32 %v3632_v61, %v1992_v59  ;;  %2001 = vadd.xlane.f32.xlu0 %v1999_v58  ;;  %2535 = vmatprep.subr.bf16.mxu0 %v3146_v57  ;;  %v2028_v57 = vld [vmem:[#allocation8 + $0x30] sm:$0xff] }
 0xca3   :  { %v3435_v63 = vpop.f32.mrf.mxu0 }
 0xca4   :  { %v2000_v1 = vmul.f32 %v4245_v62, %v4245_v62 }
 0xca6   :  { %2003 = vadd.xlane.f32.xlu1 %v2000_v1 }
 0xd2b   :  { %v2002_v58 = vpop.xlane.xlu0 %2001 }
 0xd2c   :  { %v2005_v59 = vmul.f32 0.0078125, %v2002_v58  ;;  %v2025_v58 = vld [vmem:[#allocation8 + $0x18] sm:$0xff] }
 0xd2e   :  { %v2007_v61 = vadd.f32 1e-05, %v2005_v59  ;;  %v2029_v59 = vld [vmem:[#allocation8 + $0x38] sm:$0xff] }
 0xd2f   :  { %v2004_v63 = vpop.xlane.xlu1 %2003 }
 0xd30   :  { %3595 = vrsqrt.f32 %v2007_v61  ;;  %v2006_v1 = vmul.f32 0.0078125, %v2004_v63  ;;  %v3097_v63 = vcombine.low %v2033_v30, %v2037_v31 }
 0xd32   :  { %v2008_v2 = vadd.f32 1e-05, %v2006_v1  ;;  %v3088_v1 = vcombine.high %v2024_v53, %v2028_v57 }
 0xd34   :  { %3597 = vrsqrt.f32 %v2008_v2  ;;  %v3090_v2 = vcombine.high %v2025_v58, %v2029_v59 }
 0xd3d   :  { %v3596_v56 = vpop.eup %3595 }
 0xd3e   :  { %v2011_v3 = vmul.f32 %v3596_v56, %v4241_v54  ;;  %v3087_v56 = vcombine.low %v2024_v53, %v2028_v57 }
 0xd40   :  { %v2019_v10 = vmul.f32 %v3082_v55, %v2011_v3  ;;  %v3089_v3 = vcombine.low %v2025_v58, %v2029_v59 }
 0xd41   :  { %v3598_v41 = vpop.eup %3597 }
 0xd42   :  { %v2012_v4 = vmul.f32 %v3598_v41, %v4245_v62  ;;  %v3527_v41 = vld [vmem:[#allocation10 + $0x78] sm:$0xff]  }
 0xd44   :  { %v2020_v11 = vmul.f32 %v3082_v55, %v2012_v4  ;;  %v3528_v55 = vld [vmem:[#allocation10 + $0xf8] sm:$0xff]  }
 0xd45   :  { %v3529_v4 = vld [vmem:[#allocation10 + $0x38] sm:$0xff]  }
 0xd46   :  { %v4251_v12 = vpack.c.bf16 %v2020_v11, %v2019_v10  ;;  %v3534_v10 = vld [vmem:[#allocation10 + $0xb0] sm:$0xff]   ;;  %v3535_v11 = vld [vmem:[#allocation10 + $0x68] sm:$0xff]  }
 0xd48   :  { %2439 = vmatmul.mubr.bf16.vlgmr.msra.gmra.mxu1 %v4251_v12  ;;  %2482 = vmatmul.mubr.bf16.vlgmr.msra.gmra.mxu0 %v4251_v12 }
 0xd49   :  { %2493 = vmatpush1.bf16.msra.mxu1 %v3143_v60  ;;  %2536 = vmatpush1.bf16.msra.mxu0 %v3145_v29  ;;  %v3111_v60 = vcombine.low %v2048_v36, %v2052_v37  ;;  %v2036_v29 = vld [vmem:[#allocation8 + $0x70] sm:$0xff]  ;;  %v3555_v36 = vld [vmem:[#allocation10 + $0x40] sm:$0xff]  }
 0xd4a   :  { %2494 = vmatprep.subr.bf16.mxu1 %v3136_v14  ;;  %2537 = vmatprep.subr.bf16.mxu0 %v3138_v15  ;;  %v3096_v51 = vcombine.high %v2032_v28, %v2036_v29  ;;  %v3095_v61 = vcombine.low %v2032_v28, %v2036_v29  ;;  %v3536_v14 = vld [vmem:[#allocation10 + $0xe8] sm:$0xff]   ;;  %v3556_v37 = vld [vmem:[#allocation10 + $0xc0] sm:$0xff]  }
 0xd4b   :  { %2524 = vmatprep.mubr.bf16.mxu1 %v3860_v16  ;;  %2567 = vmatprep.mubr.bf16.mxu0 %v3860_v16  ;;  %v3114_v16 = vcombine.high %v2049_v38, %v2053_v39  ;;  %v3537_v15 = vld [vmem:[#allocation10 + $0x28] sm:$0xff]   ;;  %v3557_v38 = vld [vmem:[#allocation10] sm:$0xff]  }
 0xd4c   :  { %v3558_v39 = vld [vmem:[#allocation10 + $0x80] sm:$0xff]  }
 0xd4d   :  { %2495 = vmatpush1.bf16.msra.mxu1 %v3135_v20  ;;  %2538 = vmatpush1.bf16.msra.mxu0 %v3137_v21  ;;  %v3543_v20 = vld [vmem:[#allocation10 + $0x58] sm:$0xff]  }
 0xd4e   :  { %2496 = vmatprep.subr.bf16.mxu1 %v3128_v23  ;;  %2539 = vmatprep.subr.bf16.mxu0 %v3130_v40  ;;  %v3544_v21 = vld [vmem:[#allocation10 + $0xd8] sm:$0xff]  }
 0xd4f   :  { %v3545_v23 = vld [vmem:[#allocation10 + $0x18] sm:$0xff]  }
 0xd50   :  { %v3546_v40 = vld [vmem:[#allocation10 + $0x98] sm:$0xff]  }
 0xd51   :  { %2497 = vmatpush1.bf16.msra.mxu1 %v3127_v32  ;;  %2540 = vmatpush1.bf16.msra.mxu0 %v3129_v33  ;;  %v3551_v32 = vld [vmem:[#allocation10 + $0x48] sm:$0xff]  }
 0xd52   :  { %2498 = vmatprep.subr.bf16.mxu1 %v3120_v34  ;;  %2541 = vmatprep.subr.bf16.mxu0 %v3122_v35  ;;  %v3552_v33 = vld [vmem:[#allocation10 + $0xc8] sm:$0xff]  }
 0xd53   :  { %v3553_v34 = vld [vmem:[#allocation10 + $0x8] sm:$0xff]  }
 0xd54   :  { %v3554_v35 = vld [vmem:[#allocation10 + $0x88] sm:$0xff]  }
 0xd55   :  { %2499 = vmatpush1.bf16.msra.mxu1 %v3119_v47  ;;  %2542 = vmatpush1.bf16.msra.mxu0 %v3121_v6 }
 0xd56   :  { %2500 = vmatprep.subr.bf16.mxu1 %v3112_v48  ;;  %2543 = vmatprep.subr.bf16.mxu0 %v3114_v16 }
 0xd59   :  { %2501 = vmatpush1.bf16.msra.mxu1 %v3111_v60  ;;  %2544 = vmatpush1.bf16.msra.mxu0 %v3113_v45 }
 0xd5a   :  { %2502 = vmatprep.subr.bf16.mxu1 %v3104_v26  ;;  %2545 = vmatprep.subr.bf16.mxu0 %v3106_v27 }
 0xd5d   :  { %2503 = vmatpush1.bf16.msra.mxu1 %v3103_v49  ;;  %2546 = vmatpush1.bf16.msra.mxu0 %v3105_v50 }
 0xd5e   :  { %2504 = vmatprep.subr.bf16.mxu1 %v3096_v51  ;;  %2547 = vmatprep.subr.bf16.mxu0 %v3098_v52 }
 0xd61   :  { %2505 = vmatpush1.bf16.msra.mxu1 %v3095_v61  ;;  %2548 = vmatpush1.bf16.msra.mxu0 %v3097_v63 }
 0xd62   :  { %2506 = vmatprep.subr.bf16.mxu1 %v3088_v1  ;;  %2549 = vmatprep.subr.bf16.mxu0 %v3090_v2 }
 0xd65   :  { %2507 = vmatpush1.bf16.msra.mxu1 %v3087_v56  ;;  %2550 = vmatpush1.bf16.msra.mxu0 %v3089_v3 }
 0xd66   :  { %3260 = vmatprep.subr.bf16.mxu1 %v3527_v41  ;;  %3282 = vmatprep.subr.bf16.mxu0 %v3528_v55 }
 0xd68   :  { %2525 = vmatmul.mubr.bf16.vlgmr.msra.gmra.mxu1 %v4251_v12  ;;  %2568 = vmatmul.mubr.bf16.vlgmr.msra.gmra.mxu0 %v4251_v12  ;;  %v3538_v12 = vld [vmem:[#allocation10 + $0xa8] sm:$0xff]  }
 0xd69   :  { %3261 = vmatpush3.bf16.msra.mxu1 %v3529_v4  ;;  %3283 = vmatpush3.bf16.msra.mxu0 %v3530_v5 }
 0xd6a   :  { %3262 = vmatprep.subr.bf16.mxu1 %v3531_v46  ;;  %3284 = vmatprep.subr.bf16.mxu0 %v3532_v7 }
 0xd6d   :  { %3263 = vmatpush3.bf16.msra.mxu1 %v3533_v8  ;;  %3285 = vmatpush3.bf16.msra.mxu0 %v3534_v10 }
 0xd6e   :  { %3264 = vmatprep.subr.bf16.mxu1 %v3535_v11  ;;  %3286 = vmatprep.subr.bf16.mxu0 %v3536_v14 }
 0xd71   :  { %3265 = vmatpush3.bf16.msra.mxu1 %v3537_v15  ;;  %3287 = vmatpush3.bf16.msra.mxu0 %v3538_v12 }
 0xd72   :  { %3266 = vmatprep.subr.bf16.mxu1 %v3539_v13  ;;  %3288 = vmatprep.subr.bf16.mxu0 %v3540_v17 }
 0xd75   :  { %3267 = vmatpush3.bf16.msra.mxu1 %v3541_v18  ;;  %3289 = vmatpush3.bf16.msra.mxu0 %v3542_v19 }
 0xd76   :  { %3268 = vmatprep.subr.bf16.mxu1 %v3543_v20  ;;  %3290 = vmatprep.subr.bf16.mxu0 %v3544_v21 }
 0xd79   :  { %3269 = vmatpush3.bf16.msra.mxu1 %v3545_v23  ;;  %3291 = vmatpush3.bf16.msra.mxu0 %v3546_v40 }
 0xd7a   :  { %3270 = vmatprep.subr.bf16.mxu1 %v3547_v22  ;;  %3292 = vmatprep.subr.bf16.mxu0 %v3548_v42 }
 0xd7d   :  { %3271 = vmatpush3.bf16.msra.mxu1 %v3549_v24  ;;  %3293 = vmatpush3.bf16.msra.mxu0 %v3550_v25 }
 0xd7e   :  { %3272 = vmatprep.subr.bf16.mxu1 %v3551_v32  ;;  %3294 = vmatprep.subr.bf16.mxu0 %v3552_v33 }
 0xd81   :  { %3273 = vmatpush3.bf16.msra.mxu1 %v3553_v34  ;;  %3295 = vmatpush3.bf16.msra.mxu0 %v3554_v35 }
 0xd82   :  { %3274 = vmatprep.subr.bf16.mxu1 %v3555_v36  ;;  %3296 = vmatprep.subr.bf16.mxu0 %v3556_v37 }
 0xd85   :  { %3275 = vmatpush3.bf16.msra.mxu1 %v3557_v38  ;;  %3297 = vmatpush3.bf16.msra.mxu0 %v3558_v39 }
 0xe08   :  { %v4259_v47 = vpop.f32.mrf.mxu1  ;;  %v4261_v6 = vpop.f32.mrf.mxu0 }
 0xe09   :  { %v3147_v48 = vmul.f32 -1.442695, %v4259_v47  ;;  %v3149_v16 = vmul.f32 -1.442695, %v4261_v6 }
 0xe0a   :  { %v2442_v0 = vpop.f32.mrf.mxu1  ;;  %v2485_v9 = vpop.f32.mrf.mxu0 }
 0xe0b   :  { %3599 = vpow2.f32 %v3147_v48  ;;  %v3148_v43 = vmul.f32 -1.442695, %v2442_v0  ;;  %v3150_v44 = vmul.f32 -1.442695, %v2485_v9 }
 0xe0c   :  { %3601 = vpow2.f32 %v3149_v16  ;;  %v2444_v60 = vpop.f32.mrf.mxu1  ;;  %v2487_v45 = vpop.f32.mrf.mxu0 }
 0xe0d   :  { %3603 = vpow2.f32 %v3148_v43  ;;  %v3151_v26 = vmul.f32 -1.442695, %v2444_v60  ;;  %v3153_v27 = vmul.f32 -1.442695, %v2487_v45 }
 0xe0e   :  { %3605 = vpow2.f32 %v3150_v44  ;;  %v2446_v28 = vpop.f32.mrf.mxu1  ;;  %v2489_v29 = vpop.f32.mrf.mxu0 }
 0xe0f   :  { %3607 = vpow2.f32 %v3151_v26  ;;  %v3152_v30 = vmul.f32 -1.442695, %v2446_v28  ;;  %v3154_v31 = vmul.f32 -1.442695, %v2489_v29 }
 0xe10   :  { %3609 = vpow2.f32 %v3153_v27 }
 0xe11   :  { %3611 = vpow2.f32 %v3152_v30 }
 0xe12   :  { %3613 = vpow2.f32 %v3154_v31 }
 0xe18   :  { %v3600_v49 = vpop.eup %3599 }
 0xe19   :  { %v3602_v50 = vpop.eup %3601  ;;  %v2602_v51 = vadd.f32 1.0, %v3600_v49 }
 0xe1a   :  { %v3604_v52 = vpop.eup %3603  ;;  %v2604_v53 = vadd.f32 1.0, %v3602_v50 }
 0xe1b   :  { %v3606_v57 = vpop.eup %3605  ;;  %3615 = vrcp.f32 %v2602_v51  ;;  %v2603_v58 = vadd.f32 1.0, %v3604_v52 }
 0xe1c   :  { %v3608_v59 = vpop.eup %3607  ;;  %3617 = vrcp.f32 %v2604_v53  ;;  %v2605_v61 = vadd.f32 1.0, %v3606_v57 }
 0xe1d   :  { %v3610_v63 = vpop.eup %3609  ;;  %3619 = vrcp.f32 %v2603_v58  ;;  %v2606_v1 = vadd.f32 1.0, %v3608_v59 }
 0xe1e   :  { %v3612_v2 = vpop.eup %3611  ;;  %3621 = vrcp.f32 %v2605_v61  ;;  %v2608_v56 = vadd.f32 1.0, %v3610_v63 }
 0xe1f   :  { %v3614_v3 = vpop.eup %3613  ;;  %3623 = vrcp.f32 %v2606_v1  ;;  %v2607_v41 = vadd.f32 1.0, %v3612_v2 }
 0xe20   :  { %3625 = vrcp.f32 %v2608_v56  ;;  %v2609_v55 = vadd.f32 1.0, %v3614_v3 }
 0xe21   :  { %3627 = vrcp.f32 %v2607_v41 }
 0xe22   :  { %3629 = vrcp.f32 %v2609_v55 }
 0xe28   :  { %v3616_v4 = vpop.eup %3615  ;;  %v2526_v5 = vpop.f32.mrf.mxu1 }
 0xe29   :  { %v2569_v46 = vpop.f32.mrf.mxu0  ;;  %v3618_v7 = vpop.eup %3617  ;;  %v2626_v21 = vmul.f32 %v3616_v4, %v4259_v47 }
 0xe2a   :  { %v3620_v8 = vpop.eup %3619  ;;  %v2528_v10 = vpop.f32.mrf.mxu1  ;;  %v2628_v42 = vmul.f32 %v3618_v7, %v4261_v6 }
 0xe2b   :  { %v2571_v11 = vpop.f32.mrf.mxu0  ;;  %v3622_v14 = vpop.eup %3621  ;;  %v2627_v17 = vmul.f32 %v3620_v8, %v2442_v0  ;;  %v2634_v38 = vmul.f32 %v2626_v21, %v2526_v5 }
 0xe2c   :  { %v3624_v15 = vpop.eup %3623  ;;  %v2530_v12 = vpop.f32.mrf.mxu1  ;;  %v2629_v23 = vmul.f32 %v3622_v14, %v2485_v9  ;;  %v2636_v16 = vmul.f32 %v2628_v42, %v2569_v46 }
 0xe2d   :  { %v3626_v13 = vpop.eup %3625  ;;  %v2630_v18 = vmul.f32 %v3624_v15, %v2444_v60  ;;  %v2573_v19 = vpop.f32.mrf.mxu0  ;;  %v2635_v34 = vmul.f32 %v2627_v17, %v2528_v10 }
 0xe2e   :  { %v3628_v20 = vpop.eup %3627  ;;  %v2632_v40 = vmul.f32 %v3626_v13, %v2487_v45  ;;  %v2532_v33 = vpop.f32.mrf.mxu1  ;;  %v2637_v39 = vmul.f32 %v2629_v23, %v2571_v11 }
 0xe2f   :  { %v3630_v22 = vpop.eup %3629  ;;  %v2631_v24 = vmul.f32 %v3628_v20, %v2446_v28  ;;  %v2638_v32 = vmul.f32 %v2630_v18, %v2530_v12  ;;  %v2575_v37 = vpop.f32.mrf.mxu0 }
 0xe30   :  { %v2633_v25 = vmul.f32 %v3630_v22, %v2489_v29  ;;  %v2640_v35 = vmul.f32 %v2632_v40, %v2573_v19 }
 0xe31   :  { %v2639_v36 = vmul.f32 %v2631_v24, %v2532_v33  ;;  %v2642_v43 = vpack.c.bf16 %v2638_v32, %v2634_v38 }
 0xe32   :  { %v2641_v48 = vmul.f32 %v2633_v25, %v2575_v37  ;;  %v2644_v9 = vpack.c.bf16 %v2640_v35, %v2636_v16 }
 0xe33   :  { %v2643_v0 = vpack.c.bf16 %v2639_v36, %v2635_v34 }
 0xe34   :  { %v2645_v47 = vpack.c.bf16 %v2641_v48, %v2637_v39 }
 0xe35   :  { %2934 = vmatprep.mubr.bf16.mxu1 %v2643_v0 }
 0xe36   :  { %2975 = vmatprep.mubr.bf16.mxu0 %v2645_v47  ;;  %2935 = vmatmul.mubr.bf16.vlgmr.msra.gmra.mxu1 %v2642_v43 }
 0xe37   :  { %2976 = vmatmul.mubr.bf16.vlgmr.msra.gmra.mxu0 %v2644_v9 }
 0xef6   :  { %v3276_v6 = vpop.f32.mrf.mxu1 }
 0xef7   :  { %v3298_v44 = vpop.f32.mrf.mxu0 }
 0xef8   :  { %v3277_v60 = vpop.f32.mrf.mxu1 }
 0xef9   :  { %v3278_v45 = vadd.f32 %v3277_v60, %v3276_v6  ;;  %v3299_v26 = vpop.f32.mrf.mxu0 }
 0xefa   :  { %v3300_v27 = vadd.f32 %v3299_v26, %v3298_v44  ;;  %v3279_v28 = vpop.f32.mrf.mxu1 }
 0xefb   :  { %v3301_v29 = vpop.f32.mrf.mxu0 }
 0xefc   :  { %v2978_v30 = vadd.f32 %v3300_v27, %v3278_v45  ;;  %v3280_v31 = vpop.f32.mrf.mxu1 }
 0xefd   :  { %v3281_v49 = vadd.f32 %v3280_v31, %v3279_v28  ;;  %v3302_v50 = vpop.f32.mrf.mxu0 }
 0xefe   :  { %v2984_v51 = vadd.f32 %v2978_v30, %v4241_v54  ;;  %v3303_v52 = vadd.f32 %v3302_v50, %v3301_v29 }
 0xf00   :  { %2986 = vst [vmem:[#allocation17] sm:$0xff] %v2984_v51  ;;  %v2981_v53 = vadd.f32 %v3303_v52, %v3281_v49 }
 0xf02   :  { %v2985_v57 = vadd.f32 %v2981_v53, %v4245_v62 }
 0xf04   :  { %2987 = vst [vmem:[#allocation17 + $0x8] sm:$0xff] %v2985_v57 }
 0xf05   :  { %3824 = shalt.err (!%p3821_p7)
}
 0xf06   :  { %2999 = dma.vmem_to_hbm [thread:$0]  %s2994_s25, 256, %s4285_s10, [#allocation4], %s3847_s18, %s3847_s18, %s3848_s19  }
 0xf07   :  { %3843 = dma.done.wait [#allocation4], 256  }
 0xf08   :  { %3844 = vsyncadd [#allocation4], 4294967040 }
 0xf09   :  { %3003 = vsyncpa [#allocation3], 1 }
 0xf0a   :  { %3004 = vsyncpa [#allocation6], 1 }
 0xf0b   :  { %3005 = vsyncpa [#allocation9], 1 }
 0xf0c   :  { %3006 = vsyncpa [#allocation12], 1 }
 0xf0d   :  { %3007 = vsyncpa [#allocation15], 1 }
 0xf0e   :  { %3008 = vsyncpa [#allocation4], 1 }

</bundles_post_ra>
